<compile_context>
chip_gen: v6e
topology: v6e:2x2x1
jax: 0.10.0
libtpu: 0.0.40
codegen_flags: <defaults>
</compile_context>

<pallas_src>
import functools

import jax
import jax.numpy as jnp
from jax.experimental import pallas as pl
from jax.experimental.pallas import tpu as pltpu


# ----------------------------------------------------------------------------
# Kernel 1: per-block masked self-attention (mSA) + source2token SA (s2tSA).
# One grid step = GB blocks, as an (r, GB, d) offset-major tile.
# ----------------------------------------------------------------------------
def _stage1_kernel(x_ref, mW12_ref, mb_ref, sW1_ref, sb1_ref, sW_ref, sb_ref,
                   h_ref, v_ref, *, r, c, mask):
    d = x_ref.shape[-1]
    inv_c = 1.0 / c
    mb = mb_ref[...]                                       # (1, d)

    xs = [x_ref[o] for o in range(r)]                      # r x (GB, d)
    # fused [m_W1 | m_W2] matmul, split along the lanes afterwards
    xij = [jnp.dot(xs[o], mW12_ref[...], preferred_element_type=jnp.float32)
           for o in range(r)]
    xi = [xij[o][:, :d] + mb for o in range(r)]
    xj = [xij[o][:, d:] for o in range(r)]

    # intra-block masked self-attention: one-pass softmax (tanh bounds f by c)
    hs = []
    for o in range(r):
        o2s = list(range(o + 1, r)) if mask == 'fw' else list(range(o))
        if o2s:
            den = jnp.exp(c * jnp.tanh((xi[o] + xj[o2s[0]]) * inv_c))
            for o2 in o2s[1:]:
                den = den + jnp.exp(c * jnp.tanh((xi[o] + xj[o2]) * inv_c))
            # softmax weights applied to the query row (matches the reference)
            h_o = (xs[o] * den) / den
        else:
            h_o = jnp.zeros_like(xs[o])                    # boundary row -> 0
        hs.append(h_o)
        h_ref[o] = h_o

    # source2token self-attention: softmax over the r offsets of each block
    f2s = []
    for o in range(r):
        f1 = jnp.maximum(
            jnp.dot(hs[o], sW1_ref[...], preferred_element_type=jnp.float32)
            + sb1_ref[...], 0.0)
        f2s.append(jnp.dot(f1, sW_ref[...], preferred_element_type=jnp.float32)
                   + sb_ref[...])
    gmax = f2s[0]
    for t in f2s[1:]:
        gmax = jnp.maximum(gmax, t)
    gden = None
    num = None
    for o in range(r):
        ex = jnp.exp(f2s[o] - gmax)
        gden = ex if gden is None else gden + ex
        num = ex * hs[o] if num is None else num + ex * hs[o]
    # per-block vector v emitted at block granularity (GB, d)
    v_ref[...] = num * pl.reciprocal(gden, approx=True)


# ----------------------------------------------------------------------------
# Kernel 2: block-level mSA over v + gate  e = G*o + (1-G)*v.
# One grid step = BB batches, as a (bn, BB, d) offset-major tile.
# ----------------------------------------------------------------------------
def _stage2_kernel(v_ref, mW12_ref, mb_ref, gW1_ref, gW2_ref, gb_ref,
                   e_ref, *, bn, c, mask):
    d = v_ref.shape[-1]
    inv_c = 1.0 / c
    mb = mb_ref[...]

    vs = [v_ref[o] for o in range(bn)]                     # bn x (BB, d)
    vij = [jnp.dot(vs[o], mW12_ref[...], preferred_element_type=jnp.float32)
           for o in range(bn)]
    vi = [vij[o][:, :d] + mb for o in range(bn)]
    vj = [vij[o][:, d:] for o in range(bn)]

    # TODO(synk): for very large bn, replace this O(bn^2) Python unroll by a
    # lax.fori_loop streaming over dynamically-indexed offset slices.
    for o in range(bn):
        o2s = list(range(o + 1, bn)) if mask == 'fw' else list(range(o))
        if o2s:
            den = jnp.exp(c * jnp.tanh((vi[o] + vj[o2s[0]]) * inv_c))
            for o2 in o2s[1:]:
                den = den + jnp.exp(c * jnp.tanh((vi[o] + vj[o2]) * inv_c))
            ob = (vs[o] * den) / den
        else:
            ob = jnp.zeros_like(vs[o])
        z = (jnp.dot(ob, gW1_ref[...], preferred_element_type=jnp.float32)
             + jnp.dot(vs[o], gW2_ref[...], preferred_element_type=jnp.float32)
             + gb_ref[...])
        g = pl.reciprocal(1.0 + jnp.exp(-z), approx=True)  # sigmoid via EUP
        e_ref[o] = g * ob + (1.0 - g) * vs[o]


# ----------------------------------------------------------------------------
# Kernel 3: feature-fusion gate over (x, h, E).  Same offset-major tiling as
# stage 1; the block->token broadcast of e is free (same (GB, d) tile reused
# for every offset), and [f_W1|f_W2] are fused per input slice.
# ----------------------------------------------------------------------------
def _stage3_kernel(x_ref, h_ref, e_ref, wx_ref, wh_ref, we_ref, b12_ref,
                   u_ref, *, r):
    d = x_ref.shape[-1]
    eb = e_ref[...]                                        # (GB, d)
    # shared across the r offsets of every block
    epre = (jnp.dot(eb, we_ref[...], preferred_element_type=jnp.float32)
            + b12_ref[...])                                # (GB, 2d)
    for o in range(r):
        xo = x_ref[o]
        ho = h_ref[o]
        pre = (jnp.dot(xo, wx_ref[...], preferred_element_type=jnp.float32)
               + jnp.dot(ho, wh_ref[...], preferred_element_type=jnp.float32)
               + epre)                                     # (GB, 2d): [f_W1|f_W2]
        fusion = jnp.maximum(pre[:, :d], 0.0)
        g = pl.reciprocal(1.0 + jnp.exp(-pre[:, d:]), approx=True)
        u_ref[o] = g * fusion + (1.0 - g) * xo


# ----------------------------------------------------------------------------
# Parameters (deterministic xavier_uniform weights, zero biases).
# ----------------------------------------------------------------------------
def init_params(key, d):
    def xavier(k, fan_in, fan_out):
        a = (6.0 / (fan_in + fan_out)) ** 0.5
        return jax.random.uniform(k, (fan_in, fan_out), jnp.float32, -a, a)

    ks = jax.random.split(key, 8)
    zeros = lambda: jnp.zeros((1, d), jnp.float32)
    return {
        'm_W1': xavier(ks[0], d, d), 'm_W2': xavier(ks[1], d, d), 'm_b': zeros(),
        's2t_W1': xavier(ks[2], d, d), 's2t_b1': zeros(),
        's2t_W': xavier(ks[3], d, d), 's2t_b': zeros(),
        'g_W1': xavier(ks[4], d, d), 'g_W2': xavier(ks[5], d, d), 'g_b': zeros(),
        'f_W1': xavier(ks[6], 3 * d, d), 'f_b1': zeros(),
        'f_W2': xavier(ks[7], 3 * d, d), 'f_b2': zeros(),
    }


# ----------------------------------------------------------------------------
# Pallas-backed mBloSA forward.
# ----------------------------------------------------------------------------
def mblosa_forward(x, p, *, r, c, mask='fw',
                   blocks_per_step=1024, batches_per_step=64):
    if mask not in ('fw', 'bw'):
        raise NotImplementedError('only fw or bw mask is allowed!')

    B, n, d = x.shape
    pad_len = (r - n % r) % r
    xp = jnp.pad(x, ((0, 0), (0, pad_len), (0, 0))) if pad_len else x
    n_pad = n + pad_len
    bn = n_pad // r
    G = B * bn                                    # total (batch, block) pairs

    # ---- stage-1/3 tiling: GB blocks per grid step, sublane-aligned --------
    gb_cap = max(8, (2 * 1024 * 1024) // (r * d * 4))   # keep tiles ~<=2 MiB
    GB0 = max(1, min(blocks_per_step, gb_cap, G))
    nsteps1 = -(-G // GB0)
    GB = ((-(-G // nsteps1) + 7) // 8) * 8
    Gp = nsteps1 * GB

    # offset-major token layout: (r, Gp, d)
    x_off = jnp.transpose(xp.reshape(G, r, d), (1, 0, 2))
    if Gp > G:
        x_off = jnp.pad(x_off, ((0, 0), (0, Gp - G), (0, 0)))

    def wfull(a):                                  # resident full-array input
        nd = a.ndim
        return pl.BlockSpec(a.shape, lambda g: (0,) * nd)

    tok_spec = pl.BlockSpec((r, GB, d), lambda g: (0, g, 0))
    blk_spec = pl.BlockSpec((GB, d), lambda g: (g, 0))

    cp = pltpu.CompilerParams(dimension_semantics=("parallel",),
                              vmem_limit_bytes=48 * 1024 * 1024)

    mW12 = jnp.concatenate([p['m_W1'], p['m_W2']], axis=1)        # (d, 2d)

    # ---- stage 1: per-block mSA + s2tSA -------------------------------------
    cost1 = pl.CostEstimate(flops=int(8 * Gp * r * d * d),
                            transcendentals=int(Gp * d * (r * r + r)),
                            bytes_accessed=int(4 * (2 * r * Gp * d + Gp * d)))
    h_off, v_blk = pl.pallas_call(
        functools.partial(_stage1_kernel, r=r, c=c, mask=mask),
        grid=(nsteps1,),
        in_specs=[tok_spec, wfull(mW12), wfull(p['m_b']),
                  wfull(p['s2t_W1']), wfull(p['s2t_b1']),
                  wfull(p['s2t_W']), wfull(p['s2t_b'])],
        out_specs=(tok_spec, blk_spec),
        out_shape=(jax.ShapeDtypeStruct((r, Gp, d), jnp.float32),
                   jax.ShapeDtypeStruct((Gp, d), jnp.float32)),
        compiler_params=cp,
        cost_estimate=cost1,
    )(x_off, mW12, p['m_b'], p['s2t_W1'], p['s2t_b1'], p['s2t_W'], p['s2t_b'])

    # ---- stage 2: block-level mSA over v + gate -> e, tiled over batches ----
    bb_cap = max(8, (2 * 1024 * 1024) // (bn * d * 4))
    BB0 = max(1, min(batches_per_step, bb_cap, B))
    nsteps2 = -(-B // BB0)
    BB = ((-(-B // nsteps2) + 7) // 8) * 8
    Bp = nsteps2 * BB

    v_bat = jnp.transpose(v_blk[:G].reshape(B, bn, d), (1, 0, 2))  # (bn, B, d)
    if Bp > B:
        v_bat = jnp.pad(v_bat, ((0, 0), (0, Bp - B), (0, 0)))

    bat_spec = pl.BlockSpec((bn, BB, d), lambda b: (0, b, 0))
    cost2 = pl.CostEstimate(flops=int(8 * Bp * bn * d * d),
                            transcendentals=int(Bp * d * (bn * bn + bn)),
                            bytes_accessed=int(4 * 2 * bn * Bp * d))
    e_bat = pl.pallas_call(
        functools.partial(_stage2_kernel, bn=bn, c=c, mask=mask),
        grid=(nsteps2,),
        in_specs=[bat_spec, wfull(mW12), wfull(p['m_b']),
                  wfull(p['g_W1']), wfull(p['g_W2']), wfull(p['g_b'])],
        out_specs=bat_spec,
        out_shape=jax.ShapeDtypeStruct((bn, Bp, d), jnp.float32),
        compiler_params=cp,
        cost_estimate=cost2,
    )(v_bat, mW12, p['m_b'], p['g_W1'], p['g_W2'], p['g_b'])

    # back to block-major (one e row per global block), padded to Gp
    e_blk = jnp.transpose(e_bat[:, :B], (1, 0, 2)).reshape(G, d)
    if Gp > G:
        e_blk = jnp.pad(e_blk, ((0, Gp - G), (0, 0)))

    # ---- stage 3: fusion gate over (x, h, E) --------------------------------
    wx12 = jnp.concatenate([p['f_W1'][:d], p['f_W2'][:d]], axis=1)       # (d,2d)
    wh12 = jnp.concatenate([p['f_W1'][d:2 * d], p['f_W2'][d:2 * d]], axis=1)
    we12 = jnp.concatenate([p['f_W1'][2 * d:], p['f_W2'][2 * d:]], axis=1)
    b12 = jnp.concatenate([p['f_b1'], p['f_b2']], axis=1)                # (1,2d)

    cost3 = pl.CostEstimate(flops=int(8 * Gp * r * d * d + 8 * Gp * d * d),
                            transcendentals=int(2 * Gp * r * d),
                            bytes_accessed=int(4 * (3 * r * Gp * d + Gp * d)))
    u_off = pl.pallas_call(
        functools.partial(_stage3_kernel, r=r),
        grid=(nsteps1,),
        in_specs=[tok_spec, tok_spec, blk_spec,
                  wfull(wx12), wfull(wh12), wfull(we12), wfull(b12)],
        out_specs=tok_spec,
        out_shape=jax.ShapeDtypeStruct((r, Gp, d), jnp.float32),
        compiler_params=cp,
        cost_estimate=cost3,
    )(x_off, h_off, e_blk, wx12, wh12, we12, b12)

    u = jnp.transpose(u_off[:, :G], (1, 0, 2)).reshape(B, n_pad, d)
    return u[:, :n, :]


# ----------------------------------------------------------------------------
# Pure-JAX reference (mirrors the PyTorch code) for a correctness check.
# ----------------------------------------------------------------------------
def _msa_ref(x, p, c, mask):
    L, d = x.shape[-2], x.shape[-1]
    xi = (x @ p['m_W1'])[..., :, None, :]
    xj = (x @ p['m_W2'])[..., None, :, :]
    f = c * jnp.tanh((xi + xj + p['m_b'][0]) / c)                  # (..., L, L, d)
    if L > 1:
        ii = jnp.arange(L)[:, None]
        jj = jnp.arange(L)[None, :]
        pad = jnp.zeros(f.shape[:-3] + (1, L, d), f.dtype)
        if mask == 'fw':
            M = jnp.where(ii >= jj, -jnp.inf, 0.0)[..., None]
            P = jax.nn.softmax((f + M)[..., :L - 1, :, :], axis=-2)
            P = jnp.concatenate([P, pad], axis=-3)
        else:
            M = jnp.where(jj >= ii, -jnp.inf, 0.0)[..., None]
            P = jax.nn.softmax((f + M)[..., 1:, :, :], axis=-2)
            P = jnp.concatenate([pad, P], axis=-3)
    else:
        P = jnp.zeros_like(f)
    return jnp.sum(P * x[..., :, None, :], axis=-2)


def _s2t_ref(x, p):
    f = jax.nn.relu(x @ p['s2t_W1'] + p['s2t_b1'][0])
    f = jax.nn.softmax(f @ p['s2t_W'] + p['s2t_b'][0], axis=-2)
    return jnp.sum(f * x, axis=-2)


def mblosa_ref(x, p, *, r, c, mask='fw'):
    B, n, d = x.shape
    pad_len = (r - n % r) % r
    xp = jnp.pad(x, ((0, 0), (0, pad_len), (0, 0))) if pad_len else x
    bn = xp.shape[1] // r
    xb = xp.reshape(B, bn, r, d)
    h = _msa_ref(xb, p, c, mask)
    v = _s2t_ref(h, p)
    o = _msa_ref(v, p, c, mask)
    G = jax.nn.sigmoid(o @ p['g_W1'] + v @ p['g_W2'] + p['g_b'][0])
    e = G * o + (1 - G) * v
    E = jnp.repeat(e, r, axis=1)[:, :n, :]
    xf = xb.reshape(B, bn * r, d)[:, :n, :]
    hf = h.reshape(B, bn * r, d)[:, :n, :]
    cat = jnp.concatenate([xf, hf, E], axis=2)
    fusion = jax.nn.relu(cat @ p['f_W1'] + p['f_b1'][0])
    Gf = jax.nn.sigmoid(cat @ p['f_W2'] + p['f_b2'][0])
    return Gf * fusion + (1 - Gf) * xf


if __name__ == "__main__":
    # args: word_dim=32, r=4, c=5.0, mask='fw'; batch=2, seq_len=10 (pads to 12).
    B, N, D, R, C = 2, 10, 32, 4, 5.0
    key = jax.random.PRNGKey(0)
    kx, kp = jax.random.split(key)
    x = jax.random.normal(kx, (B, N, D), jnp.float32)
    params = init_params(kp, D)

    fwd = jax.jit(functools.partial(mblosa_forward, r=R, c=C, mask='fw'))
    u = fwd(x, params)
    u = jax.block_until_ready(u)

    u_ref = mblosa_ref(x, params, r=R, c=C, mask='fw')
    assert u.shape == (B, N, D)
    assert jnp.allclose(u, u_ref, atol=2e-2, rtol=2e-2), "mismatch vs reference"
    print("KERNEL_OK")
</pallas_src>

<mosaic_0001>
module attributes {stable_mosaic.version = 11 : i64} {
  func.func @_stage3_kernel(%arg0: i32, %arg1: memref<4x8x32xf32, #tpu.memory_space<vmem>>, %arg2: memref<4x8x32xf32, #tpu.memory_space<vmem>>, %arg3: memref<8x32xf32, #tpu.memory_space<vmem>>, %arg4: memref<32x64xf32, #tpu.memory_space<vmem>>, %arg5: memref<32x64xf32, #tpu.memory_space<vmem>>, %arg6: memref<32x64xf32, #tpu.memory_space<vmem>>, %arg7: memref<1x64xf32, #tpu.memory_space<vmem>>, %arg8: memref<4x8x32xf32, #tpu.memory_space<vmem>>) attributes {dimension_semantics = [#tpu.dimension_semantics<parallel>], iteration_bounds = array<i64: 1>, scalar_prefetch = 0 : i64, scratch_operands = 0 : i64, tpu.core_type = #tpu.core_type<tc>, window_params = [{transform_indices = @transform_0, window_bounds = array<i64: 4, 8, 32>}, {transform_indices = @transform_1, window_bounds = array<i64: 4, 8, 32>}, {transform_indices = @transform_2, window_bounds = array<i64: 8, 32>}, {pipeline_mode = #tpu.pipeline_mode<synchronous>, transform_indices = @transform_3, window_bounds = array<i64: 32, 64>}, {pipeline_mode = #tpu.pipeline_mode<synchronous>, transform_indices = @transform_4, window_bounds = array<i64: 32, 64>}, {pipeline_mode = #tpu.pipeline_mode<synchronous>, transform_indices = @transform_5, window_bounds = array<i64: 32, 64>}, {pipeline_mode = #tpu.pipeline_mode<synchronous>, transform_indices = @transform_6, window_bounds = array<i64: 1, 64>}, {transform_indices = @transform_7, window_bounds = array<i64: 4, 8, 32>}]} {
    %c0 = arith.constant 0 : index
    %c0_0 = arith.constant 0 : index
    %0 = vector.load %arg3[%c0, %c0_0] : memref<8x32xf32, #tpu.memory_space<vmem>>, vector<8x32xf32>
    %c0_1 = arith.constant 0 : index
    %c0_2 = arith.constant 0 : index
    %1 = vector.load %arg6[%c0_1, %c0_2] : memref<32x64xf32, #tpu.memory_space<vmem>>, vector<32x64xf32>
    %cst = arith.constant dense<0.000000e+00> : vector<8x64xf32>
    %2 = tpu.matmul %0, %1, %cst {dimension_numbers = #tpu.dot_dimension_numbers<[1], [0], [0], [1], [0, 0, 1, 1], [], []>} : vector<8x32xf32>, vector<32x64xf32>, vector<8x64xf32> -> vector<8x64xf32>
    %c0_3 = arith.constant 0 : index
    %c0_4 = arith.constant 0 : index
    %3 = vector.load %arg7[%c0_3, %c0_4] : memref<1x64xf32, #tpu.memory_space<vmem>>, vector<1x64xf32>
    %4 = vector.broadcast %3 : vector<1x64xf32> to vector<8x64xf32>
    %5 = arith.addf %2, %4 : vector<8x64xf32>
    %c0_5 = arith.constant 0 : index
    %c0_6 = arith.constant 0 : index
    %c0_7 = arith.constant 0 : index
    %6 = vector.load %arg1[%c0_5, %c0_6, %c0_7] : memref<4x8x32xf32, #tpu.memory_space<vmem>>, vector<1x8x32xf32>
    %7 = vector.shape_cast %6 : vector<1x8x32xf32> to vector<8x32xf32>
    %c0_8 = arith.constant 0 : index
    %c0_9 = arith.constant 0 : index
    %c0_10 = arith.constant 0 : index
    %8 = vector.load %arg2[%c0_8, %c0_9, %c0_10] : memref<4x8x32xf32, #tpu.memory_space<vmem>>, vector<1x8x32xf32>
    %9 = vector.shape_cast %8 : vector<1x8x32xf32> to vector<8x32xf32>
    %c0_11 = arith.constant 0 : index
    %c0_12 = arith.constant 0 : index
    %10 = vector.load %arg4[%c0_11, %c0_12] : memref<32x64xf32, #tpu.memory_space<vmem>>, vector<32x64xf32>
    %cst_13 = arith.constant dense<0.000000e+00> : vector<8x64xf32>
    %11 = tpu.matmul %7, %10, %cst_13 {dimension_numbers = #tpu.dot_dimension_numbers<[1], [0], [0], [1], [0, 0, 1, 1], [], []>} : vector<8x32xf32>, vector<32x64xf32>, vector<8x64xf32> -> vector<8x64xf32>
    %c0_14 = arith.constant 0 : index
    %c0_15 = arith.constant 0 : index
    %12 = vector.load %arg5[%c0_14, %c0_15] : memref<32x64xf32, #tpu.memory_space<vmem>>, vector<32x64xf32>
    %cst_16 = arith.constant dense<0.000000e+00> : vector<8x64xf32>
    %13 = tpu.matmul %9, %12, %cst_16 {dimension_numbers = #tpu.dot_dimension_numbers<[1], [0], [0], [1], [0, 0, 1, 1], [], []>} : vector<8x32xf32>, vector<32x64xf32>, vector<8x64xf32> -> vector<8x64xf32>
    %14 = arith.addf %11, %13 : vector<8x64xf32>
    %15 = arith.addf %14, %5 : vector<8x64xf32>
    %16 = vector.extract_strided_slice %15 {offsets = [0, 0], sizes = [8, 32], strides = [1, 1]} : vector<8x64xf32> to vector<8x32xf32>
    %cst_17 = arith.constant 0.000000e+00 : f32
    %17 = vector.broadcast %cst_17 : f32 to vector<8x32xf32>
    %18 = arith.maximumf %16, %17 : vector<8x32xf32>
    %19 = vector.extract_strided_slice %15 {offsets = [0, 32], sizes = [8, 32], strides = [1, 1]} : vector<8x64xf32> to vector<8x32xf32>
    %cst_18 = arith.constant 0.000000e+00 : f32
    %20 = vector.broadcast %cst_18 : f32 to vector<8x32xf32>
    %21 = arith.subf %20, %19 : vector<8x32xf32>
    %22 = math.exp %21 : vector<8x32xf32>
    %cst_19 = arith.constant 1.000000e+00 : f32
    %23 = vector.broadcast %cst_19 : f32 to vector<8x32xf32>
    %24 = arith.addf %23, %22 : vector<8x32xf32>
    %25 = tpu.reciprocal %24 {approx = true} : vector<8x32xf32> -> vector<8x32xf32>
    %26 = arith.mulf %25, %18 : vector<8x32xf32>
    %cst_20 = arith.constant 1.000000e+00 : f32
    %27 = vector.broadcast %cst_20 : f32 to vector<8x32xf32>
    %28 = arith.subf %27, %25 : vector<8x32xf32>
    %29 = arith.mulf %28, %7 : vector<8x32xf32>
    %30 = arith.addf %26, %29 : vector<8x32xf32>
    %c0_21 = arith.constant 0 : index
    %c0_22 = arith.constant 0 : index
    %c0_23 = arith.constant 0 : index
    %31 = vector.load %arg8[%c0_21, %c0_22, %c0_23] : memref<4x8x32xf32, #tpu.memory_space<vmem>>, vector<1x8x32xf32>
    %32 = vector.shape_cast %31 : vector<1x8x32xf32> to vector<8x32xf32>
    %33 = vector.shape_cast %30 : vector<8x32xf32> to vector<1x8x32xf32>
    tpu.vector_store %arg8[%c0_21, %c0_22, %c0_23], %33 {strides = array<i32>} : memref<4x8x32xf32, #tpu.memory_space<vmem>>, vector<1x8x32xf32>,
    %c1 = arith.constant 1 : index
    %c0_24 = arith.constant 0 : index
    %c0_25 = arith.constant 0 : index
    %34 = vector.load %arg1[%c1, %c0_24, %c0_25] : memref<4x8x32xf32, #tpu.memory_space<vmem>>, vector<1x8x32xf32>
    %35 = vector.shape_cast %34 : vector<1x8x32xf32> to vector<8x32xf32>
    %c1_26 = arith.constant 1 : index
    %c0_27 = arith.constant 0 : index
    %c0_28 = arith.constant 0 : index
    %36 = vector.load %arg2[%c1_26, %c0_27, %c0_28] : memref<4x8x32xf32, #tpu.memory_space<vmem>>, vector<1x8x32xf32>
    %37 = vector.shape_cast %36 : vector<1x8x32xf32> to vector<8x32xf32>
    %c0_29 = arith.constant 0 : index
    %c0_30 = arith.constant 0 : index
    %38 = vector.load %arg4[%c0_29, %c0_30] : memref<32x64xf32, #tpu.memory_space<vmem>>, vector<32x64xf32>
    %cst_31 = arith.constant dense<0.000000e+00> : vector<8x64xf32>
    %39 = tpu.matmul %35, %38, %cst_31 {dimension_numbers = #tpu.dot_dimension_numbers<[1], [0], [0], [1], [0, 0, 1, 1], [], []>} : vector<8x32xf32>, vector<32x64xf32>, vector<8x64xf32> -> vector<8x64xf32>
    %c0_32 = arith.constant 0 : index
    %c0_33 = arith.constant 0 : index
    %40 = vector.load %arg5[%c0_32, %c0_33] : memref<32x64xf32, #tpu.memory_space<vmem>>, vector<32x64xf32>
    %cst_34 = arith.constant dense<0.000000e+00> : vector<8x64xf32>
    %41 = tpu.matmul %37, %40, %cst_34 {dimension_numbers = #tpu.dot_dimension_numbers<[1], [0], [0], [1], [0, 0, 1, 1], [], []>} : vector<8x32xf32>, vector<32x64xf32>, vector<8x64xf32> -> vector<8x64xf32>
    %42 = arith.addf %39, %41 : vector<8x64xf32>
    %43 = arith.addf %42, %5 : vector<8x64xf32>
    %44 = vector.extract_strided_slice %43 {offsets = [0, 0], sizes = [8, 32], strides = [1, 1]} : vector<8x64xf32> to vector<8x32xf32>
    %cst_35 = arith.constant 0.000000e+00 : f32
    %45 = vector.broadcast %cst_35 : f32 to vector<8x32xf32>
    %46 = arith.maximumf %44, %45 : vector<8x32xf32>
    %47 = vector.extract_strided_slice %43 {offsets = [0, 32], sizes = [8, 32], strides = [1, 1]} : vector<8x64xf32> to vector<8x32xf32>
    %cst_36 = arith.constant 0.000000e+00 : f32
    %48 = vector.broadcast %cst_36 : f32 to vector<8x32xf32>
    %49 = arith.subf %48, %47 : vector<8x32xf32>
    %50 = math.exp %49 : vector<8x32xf32>
    %cst_37 = arith.constant 1.000000e+00 : f32
    %51 = vector.broadcast %cst_37 : f32 to vector<8x32xf32>
    %52 = arith.addf %51, %50 : vector<8x32xf32>
    %53 = tpu.reciprocal %52 {approx = true} : vector<8x32xf32> -> vector<8x32xf32>
    %54 = arith.mulf %53, %46 : vector<8x32xf32>
    %cst_38 = arith.constant 1.000000e+00 : f32
    %55 = vector.broadcast %cst_38 : f32 to vector<8x32xf32>
    %56 = arith.subf %55, %53 : vector<8x32xf32>
    %57 = arith.mulf %56, %35 : vector<8x32xf32>
    %58 = arith.addf %54, %57 : vector<8x32xf32>
    %c1_39 = arith.constant 1 : index
    %c0_40 = arith.constant 0 : index
    %c0_41 = arith.constant 0 : index
    %59 = vector.load %arg8[%c1_39, %c0_40, %c0_41] : memref<4x8x32xf32, #tpu.memory_space<vmem>>, vector<1x8x32xf32>
    %60 = vector.shape_cast %59 : vector<1x8x32xf32> to vector<8x32xf32>
    %61 = vector.shape_cast %58 : vector<8x32xf32> to vector<1x8x32xf32>
    tpu.vector_store %arg8[%c1_39, %c0_40, %c0_41], %61 {strides = array<i32>} : memref<4x8x32xf32, #tpu.memory_space<vmem>>, vector<1x8x32xf32>,
    %c2 = arith.constant 2 : index
    %c0_42 = arith.constant 0 : index
    %c0_43 = arith.constant 0 : index
    %62 = vector.load %arg1[%c2, %c0_42, %c0_43] : memref<4x8x32xf32, #tpu.memory_space<vmem>>, vector<1x8x32xf32>
    %63 = vector.shape_cast %62 : vector<1x8x32xf32> to vector<8x32xf32>
    %c2_44 = arith.constant 2 : index
    %c0_45 = arith.constant 0 : index
    %c0_46 = arith.constant 0 : index
    %64 = vector.load %arg2[%c2_44, %c0_45, %c0_46] : memref<4x8x32xf32, #tpu.memory_space<vmem>>, vector<1x8x32xf32>
    %65 = vector.shape_cast %64 : vector<1x8x32xf32> to vector<8x32xf32>
    %c0_47 = arith.constant 0 : index
    %c0_48 = arith.constant 0 : index
    %66 = vector.load %arg4[%c0_47, %c0_48] : memref<32x64xf32, #tpu.memory_space<vmem>>, vector<32x64xf32>
    %cst_49 = arith.constant dense<0.000000e+00> : vector<8x64xf32>
    %67 = tpu.matmul %63, %66, %cst_49 {dimension_numbers = #tpu.dot_dimension_numbers<[1], [0], [0], [1], [0, 0, 1, 1], [], []>} : vector<8x32xf32>, vector<32x64xf32>, vector<8x64xf32> -> vector<8x64xf32>
    %c0_50 = arith.constant 0 : index
    %c0_51 = arith.constant 0 : index
    %68 = vector.load %arg5[%c0_50, %c0_51] : memref<32x64xf32, #tpu.memory_space<vmem>>, vector<32x64xf32>
    %cst_52 = arith.constant dense<0.000000e+00> : vector<8x64xf32>
    %69 = tpu.matmul %65, %68, %cst_52 {dimension_numbers = #tpu.dot_dimension_numbers<[1], [0], [0], [1], [0, 0, 1, 1], [], []>} : vector<8x32xf32>, vector<32x64xf32>, vector<8x64xf32> -> vector<8x64xf32>
    %70 = arith.addf %67, %69 : vector<8x64xf32>
    %71 = arith.addf %70, %5 : vector<8x64xf32>
    %72 = vector.extract_strided_slice %71 {offsets = [0, 0], sizes = [8, 32], strides = [1, 1]} : vector<8x64xf32> to vector<8x32xf32>
    %cst_53 = arith.constant 0.000000e+00 : f32
    %73 = vector.broadcast %cst_53 : f32 to vector<8x32xf32>
    %74 = arith.maximumf %72, %73 : vector<8x32xf32>
    %75 = vector.extract_strided_slice %71 {offsets = [0, 32], sizes = [8, 32], strides = [1, 1]} : vector<8x64xf32> to vector<8x32xf32>
    %cst_54 = arith.constant 0.000000e+00 : f32
    %76 = vector.broadcast %cst_54 : f32 to vector<8x32xf32>
    %77 = arith.subf %76, %75 : vector<8x32xf32>
    %78 = math.exp %77 : vector<8x32xf32>
    %cst_55 = arith.constant 1.000000e+00 : f32
    %79 = vector.broadcast %cst_55 : f32 to vector<8x32xf32>
    %80 = arith.addf %79, %78 : vector<8x32xf32>
    %81 = tpu.reciprocal %80 {approx = true} : vector<8x32xf32> -> vector<8x32xf32>
    %82 = arith.mulf %81, %74 : vector<8x32xf32>
    %cst_56 = arith.constant 1.000000e+00 : f32
    %83 = vector.broadcast %cst_56 : f32 to vector<8x32xf32>
    %84 = arith.subf %83, %81 : vector<8x32xf32>
    %85 = arith.mulf %84, %63 : vector<8x32xf32>
    %86 = arith.addf %82, %85 : vector<8x32xf32>
    %c2_57 = arith.constant 2 : index
    %c0_58 = arith.constant 0 : index
    %c0_59 = arith.constant 0 : index
    %87 = vector.load %arg8[%c2_57, %c0_58, %c0_59] : memref<4x8x32xf32, #tpu.memory_space<vmem>>, vector<1x8x32xf32>
    %88 = vector.shape_cast %87 : vector<1x8x32xf32> to vector<8x32xf32>
    %89 = vector.shape_cast %86 : vector<8x32xf32> to vector<1x8x32xf32>
    tpu.vector_store %arg8[%c2_57, %c0_58, %c0_59], %89 {strides = array<i32>} : memref<4x8x32xf32, #tpu.memory_space<vmem>>, vector<1x8x32xf32>,
    %c3 = arith.constant 3 : index
    %c0_60 = arith.constant 0 : index
    %c0_61 = arith.constant 0 : index
    %90 = vector.load %arg1[%c3, %c0_60, %c0_61] : memref<4x8x32xf32, #tpu.memory_space<vmem>>, vector<1x8x32xf32>
    %91 = vector.shape_cast %90 : vector<1x8x32xf32> to vector<8x32xf32>
    %c3_62 = arith.constant 3 : index
    %c0_63 = arith.constant 0 : index
    %c0_64 = arith.constant 0 : index
    %92 = vector.load %arg2[%c3_62, %c0_63, %c0_64] : memref<4x8x32xf32, #tpu.memory_space<vmem>>, vector<1x8x32xf32>
    %93 = vector.shape_cast %92 : vector<1x8x32xf32> to vector<8x32xf32>
    %c0_65 = arith.constant 0 : index
    %c0_66 = arith.constant 0 : index
    %94 = vector.load %arg4[%c0_65, %c0_66] : memref<32x64xf32, #tpu.memory_space<vmem>>, vector<32x64xf32>
    %cst_67 = arith.constant dense<0.000000e+00> : vector<8x64xf32>
    %95 = tpu.matmul %91, %94, %cst_67 {dimension_numbers = #tpu.dot_dimension_numbers<[1], [0], [0], [1], [0, 0, 1, 1], [], []>} : vector<8x32xf32>, vector<32x64xf32>, vector<8x64xf32> -> vector<8x64xf32>
    %c0_68 = arith.constant 0 : index
    %c0_69 = arith.constant 0 : index
    %96 = vector.load %arg5[%c0_68, %c0_69] : memref<32x64xf32, #tpu.memory_space<vmem>>, vector<32x64xf32>
    %cst_70 = arith.constant dense<0.000000e+00> : vector<8x64xf32>
    %97 = tpu.matmul %93, %96, %cst_70 {dimension_numbers = #tpu.dot_dimension_numbers<[1], [0], [0], [1], [0, 0, 1, 1], [], []>} : vector<8x32xf32>, vector<32x64xf32>, vector<8x64xf32> -> vector<8x64xf32>
    %98 = arith.addf %95, %97 : vector<8x64xf32>
    %99 = arith.addf %98, %5 : vector<8x64xf32>
    %100 = vector.extract_strided_slice %99 {offsets = [0, 0], sizes = [8, 32], strides = [1, 1]} : vector<8x64xf32> to vector<8x32xf32>
    %cst_71 = arith.constant 0.000000e+00 : f32
    %101 = vector.broadcast %cst_71 : f32 to vector<8x32xf32>
    %102 = arith.maximumf %100, %101 : vector<8x32xf32>
    %103 = vector.extract_strided_slice %99 {offsets = [0, 32], sizes = [8, 32], strides = [1, 1]} : vector<8x64xf32> to vector<8x32xf32>
    %cst_72 = arith.constant 0.000000e+00 : f32
    %104 = vector.broadcast %cst_72 : f32 to vector<8x32xf32>
    %105 = arith.subf %104, %103 : vector<8x32xf32>
    %106 = math.exp %105 : vector<8x32xf32>
    %cst_73 = arith.constant 1.000000e+00 : f32
    %107 = vector.broadcast %cst_73 : f32 to vector<8x32xf32>
    %108 = arith.addf %107, %106 : vector<8x32xf32>
    %109 = tpu.reciprocal %108 {approx = true} : vector<8x32xf32> -> vector<8x32xf32>
    %110 = arith.mulf %109, %102 : vector<8x32xf32>
    %cst_74 = arith.constant 1.000000e+00 : f32
    %111 = vector.broadcast %cst_74 : f32 to vector<8x32xf32>
    %112 = arith.subf %111, %109 : vector<8x32xf32>
    %113 = arith.mulf %112, %91 : vector<8x32xf32>
    %114 = arith.addf %110, %113 : vector<8x32xf32>
    %c3_75 = arith.constant 3 : index
    %c0_76 = arith.constant 0 : index
    %c0_77 = arith.constant 0 : index
    %115 = vector.load %arg8[%c3_75, %c0_76, %c0_77] : memref<4x8x32xf32, #tpu.memory_space<vmem>>, vector<1x8x32xf32>
    %116 = vector.shape_cast %115 : vector<1x8x32xf32> to vector<8x32xf32>
    %117 = vector.shape_cast %114 : vector<8x32xf32> to vector<1x8x32xf32>
    tpu.vector_store %arg8[%c3_75, %c0_76, %c0_77], %117 {strides = array<i32>} : memref<4x8x32xf32, #tpu.memory_space<vmem>>, vector<1x8x32xf32>,
    return
  }
  func.func @transform_0(%arg0: i32) -> (i32, i32, i32) {
    %c0_i32 = arith.constant 0 : i32
    %c0_i32_0 = arith.constant 0 : i32
    %c0_i32_1 = arith.constant 0 : i32
    return %c0_i32, %arg0, %c0_i32_0 : i32, i32, i32
  }
  func.func @transform_1(%arg0: i32) -> (i32, i32, i32) {
    %c0_i32 = arith.constant 0 : i32
    %c0_i32_0 = arith.constant 0 : i32
    %c0_i32_1 = arith.constant 0 : i32
    return %c0_i32, %arg0, %c0_i32_0 : i32, i32, i32
  }
  func.func @transform_2(%arg0: i32) -> (i32, i32) {
    %c0_i32 = arith.constant 0 : i32
    %c0_i32_0 = arith.constant 0 : i32
    return %arg0, %c0_i32 : i32, i32
  }
  func.func @transform_3(%arg0: i32) -> (i32, i32) {
    %c0_i32 = arith.constant 0 : i32
    %c0_i32_0 = arith.constant 0 : i32
    %c0_i32_1 = arith.constant 0 : i32
    return %c0_i32, %c0_i32_0 : i32, i32
  }
  func.func @transform_4(%arg0: i32) -> (i32, i32) {
    %c0_i32 = arith.constant 0 : i32
    %c0_i32_0 = arith.constant 0 : i32
    %c0_i32_1 = arith.constant 0 : i32
    return %c0_i32, %c0_i32_0 : i32, i32
  }
  func.func @transform_5(%arg0: i32) -> (i32, i32) {
    %c0_i32 = arith.constant 0 : i32
    %c0_i32_0 = arith.constant 0 : i32
    %c0_i32_1 = arith.constant 0 : i32
    return %c0_i32, %c0_i32_0 : i32, i32
  }
  func.func @transform_6(%arg0: i32) -> (i32, i32) {
    %c0_i32 = arith.constant 0 : i32
    %c0_i32_0 = arith.constant 0 : i32
    %c0_i32_1 = arith.constant 0 : i32
    return %c0_i32, %c0_i32_0 : i32, i32
  }
  func.func @transform_7(%arg0: i32) -> (i32, i32, i32) {
    %c0_i32 = arith.constant 0 : i32
    %c0_i32_0 = arith.constant 0 : i32
    %c0_i32_1 = arith.constant 0 : i32
    return %c0_i32, %arg0, %c0_i32_0 : i32, i32, i32
  }
}

module attributes {stable_mosaic.version = 11 : i64} {
  func.func @_stage2_kernel(%arg0: i32, %arg1: memref<3x8x32xf32, #tpu.memory_space<vmem>>, %arg2: memref<32x64xf32, #tpu.memory_space<vmem>>, %arg3: memref<1x32xf32, #tpu.memory_space<vmem>>, %arg4: memref<32x32xf32, #tpu.memory_space<vmem>>, %arg5: memref<32x32xf32, #tpu.memory_space<vmem>>, %arg6: memref<1x32xf32, #tpu.memory_space<vmem>>, %arg7: memref<3x8x32xf32, #tpu.memory_space<vmem>>) attributes {dimension_semantics = [#tpu.dimension_semantics<parallel>], iteration_bounds = array<i64: 1>, scalar_prefetch = 0 : i64, scratch_operands = 0 : i64, tpu.core_type = #tpu.core_type<tc>, window_params = [{transform_indices = @transform_0, window_bounds = array<i64: 3, 8, 32>}, {pipeline_mode = #tpu.pipeline_mode<synchronous>, transform_indices = @transform_1, window_bounds = array<i64: 32, 64>}, {pipeline_mode = #tpu.pipeline_mode<synchronous>, transform_indices = @transform_2, window_bounds = array<i64: 1, 32>}, {pipeline_mode = #tpu.pipeline_mode<synchronous>, transform_indices = @transform_3, window_bounds = array<i64: 32, 32>}, {pipeline_mode = #tpu.pipeline_mode<synchronous>, transform_indices = @transform_4, window_bounds = array<i64: 32, 32>}, {pipeline_mode = #tpu.pipeline_mode<synchronous>, transform_indices = @transform_5, window_bounds = array<i64: 1, 32>}, {transform_indices = @transform_6, window_bounds = array<i64: 3, 8, 32>}]} {
    %c0 = arith.constant 0 : index
    %c0_0 = arith.constant 0 : index
    %0 = vector.load %arg3[%c0, %c0_0] : memref<1x32xf32, #tpu.memory_space<vmem>>, vector<1x32xf32>
    %c0_1 = arith.constant 0 : index
    %c0_2 = arith.constant 0 : index
    %c0_3 = arith.constant 0 : index
    %1 = vector.load %arg1[%c0_1, %c0_2, %c0_3] : memref<3x8x32xf32, #tpu.memory_space<vmem>>, vector<1x8x32xf32>
    %2 = vector.shape_cast %1 : vector<1x8x32xf32> to vector<8x32xf32>
    %c1 = arith.constant 1 : index
    %c0_4 = arith.constant 0 : index
    %c0_5 = arith.constant 0 : index
    %3 = vector.load %arg1[%c1, %c0_4, %c0_5] : memref<3x8x32xf32, #tpu.memory_space<vmem>>, vector<1x8x32xf32>
    %4 = vector.shape_cast %3 : vector<1x8x32xf32> to vector<8x32xf32>
    %c2 = arith.constant 2 : index
    %c0_6 = arith.constant 0 : index
    %c0_7 = arith.constant 0 : index
    %5 = vector.load %arg1[%c2, %c0_6, %c0_7] : memref<3x8x32xf32, #tpu.memory_space<vmem>>, vector<1x8x32xf32>
    %6 = vector.shape_cast %5 : vector<1x8x32xf32> to vector<8x32xf32>
    %c0_8 = arith.constant 0 : index
    %c0_9 = arith.constant 0 : index
    %7 = vector.load %arg2[%c0_8, %c0_9] : memref<32x64xf32, #tpu.memory_space<vmem>>, vector<32x64xf32>
    %cst = arith.constant dense<0.000000e+00> : vector<8x64xf32>
    %8 = tpu.matmul %2, %7, %cst {dimension_numbers = #tpu.dot_dimension_numbers<[1], [0], [0], [1], [0, 0, 1, 1], [], []>} : vector<8x32xf32>, vector<32x64xf32>, vector<8x64xf32> -> vector<8x64xf32>
    %c0_10 = arith.constant 0 : index
    %c0_11 = arith.constant 0 : index
    %9 = vector.load %arg2[%c0_10, %c0_11] : memref<32x64xf32, #tpu.memory_space<vmem>>, vector<32x64xf32>
    %cst_12 = arith.constant dense<0.000000e+00> : vector<8x64xf32>
    %10 = tpu.matmul %4, %9, %cst_12 {dimension_numbers = #tpu.dot_dimension_numbers<[1], [0], [0], [1], [0, 0, 1, 1], [], []>} : vector<8x32xf32>, vector<32x64xf32>, vector<8x64xf32> -> vector<8x64xf32>
    %c0_13 = arith.constant 0 : index
    %c0_14 = arith.constant 0 : index
    %11 = vector.load %arg2[%c0_13, %c0_14] : memref<32x64xf32, #tpu.memory_space<vmem>>, vector<32x64xf32>
    %cst_15 = arith.constant dense<0.000000e+00> : vector<8x64xf32>
    %12 = tpu.matmul %6, %11, %cst_15 {dimension_numbers = #tpu.dot_dimension_numbers<[1], [0], [0], [1], [0, 0, 1, 1], [], []>} : vector<8x32xf32>, vector<32x64xf32>, vector<8x64xf32> -> vector<8x64xf32>
    %13 = vector.extract_strided_slice %8 {offsets = [0, 0], sizes = [8, 32], strides = [1, 1]} : vector<8x64xf32> to vector<8x32xf32>
    %14 = vector.broadcast %0 : vector<1x32xf32> to vector<8x32xf32>
    %15 = arith.addf %13, %14 : vector<8x32xf32>
    %16 = vector.extract_strided_slice %10 {offsets = [0, 0], sizes = [8, 32], strides = [1, 1]} : vector<8x64xf32> to vector<8x32xf32>
    %17 = vector.broadcast %0 : vector<1x32xf32> to vector<8x32xf32>
    %18 = arith.addf %16, %17 : vector<8x32xf32>
    %19 = vector.extract_strided_slice %10 {offsets = [0, 32], sizes = [8, 32], strides = [1, 1]} : vector<8x64xf32> to vector<8x32xf32>
    %20 = vector.extract_strided_slice %12 {offsets = [0, 32], sizes = [8, 32], strides = [1, 1]} : vector<8x64xf32> to vector<8x32xf32>
    %21 = arith.addf %15, %19 : vector<8x32xf32>
    %cst_16 = arith.constant 2.000000e-01 : f32
    %22 = vector.broadcast %cst_16 : f32 to vector<8x32xf32>
    %23 = arith.mulf %21, %22 : vector<8x32xf32>
    %24 = math.tanh %23 : vector<8x32xf32>
    %cst_17 = arith.constant 5.000000e+00 : f32
    %25 = vector.broadcast %cst_17 : f32 to vector<8x32xf32>
    %26 = arith.mulf %25, %24 : vector<8x32xf32>
    %27 = math.exp %26 : vector<8x32xf32>
    %28 = arith.addf %15, %20 : vector<8x32xf32>
    %cst_18 = arith.constant 2.000000e-01 : f32
    %29 = vector.broadcast %cst_18 : f32 to vector<8x32xf32>
    %30 = arith.mulf %28, %29 : vector<8x32xf32>
    %31 = math.tanh %30 : vector<8x32xf32>
    %cst_19 = arith.constant 5.000000e+00 : f32
    %32 = vector.broadcast %cst_19 : f32 to vector<8x32xf32>
    %33 = arith.mulf %32, %31 : vector<8x32xf32>
    %34 = math.exp %33 : vector<8x32xf32>
    %35 = arith.addf %27, %34 : vector<8x32xf32>
    %36 = arith.mulf %2, %35 : vector<8x32xf32>
    %37 = arith.divf %36, %35 : vector<8x32xf32>
    %c0_20 = arith.constant 0 : index
    %c0_21 = arith.constant 0 : index
    %38 = vector.load %arg4[%c0_20, %c0_21] : memref<32x32xf32, #tpu.memory_space<vmem>>, vector<32x32xf32>
    %cst_22 = arith.constant dense<0.000000e+00> : vector<8x32xf32>
    %39 = tpu.matmul %37, %38, %cst_22 {dimension_numbers = #tpu.dot_dimension_numbers<[1], [0], [0], [1], [0, 0, 1, 1], [], []>} : vector<8x32xf32>, vector<32x32xf32>, vector<8x32xf32> -> vector<8x32xf32>
    %c0_23 = arith.constant 0 : index
    %c0_24 = arith.constant 0 : index
    %40 = vector.load %arg5[%c0_23, %c0_24] : memref<32x32xf32, #tpu.memory_space<vmem>>, vector<32x32xf32>
    %cst_25 = arith.constant dense<0.000000e+00> : vector<8x32xf32>
    %41 = tpu.matmul %2, %40, %cst_25 {dimension_numbers = #tpu.dot_dimension_numbers<[1], [0], [0], [1], [0, 0, 1, 1], [], []>} : vector<8x32xf32>, vector<32x32xf32>, vector<8x32xf32> -> vector<8x32xf32>
    %42 = arith.addf %39, %41 : vector<8x32xf32>
    %c0_26 = arith.constant 0 : index
    %c0_27 = arith.constant 0 : index
    %43 = vector.load %arg6[%c0_26, %c0_27] : memref<1x32xf32, #tpu.memory_space<vmem>>, vector<1x32xf32>
    %44 = vector.broadcast %43 : vector<1x32xf32> to vector<8x32xf32>
    %45 = arith.addf %42, %44 : vector<8x32xf32>
    %cst_28 = arith.constant 0.000000e+00 : f32
    %46 = vector.broadcast %cst_28 : f32 to vector<8x32xf32>
    %47 = arith.subf %46, %45 : vector<8x32xf32>
    %48 = math.exp %47 : vector<8x32xf32>
    %cst_29 = arith.constant 1.000000e+00 : f32
    %49 = vector.broadcast %cst_29 : f32 to vector<8x32xf32>
    %50 = arith.addf %49, %48 : vector<8x32xf32>
    %51 = tpu.reciprocal %50 {approx = true} : vector<8x32xf32> -> vector<8x32xf32>
    %52 = arith.mulf %51, %37 : vector<8x32xf32>
    %cst_30 = arith.constant 1.000000e+00 : f32
    %53 = vector.broadcast %cst_30 : f32 to vector<8x32xf32>
    %54 = arith.subf %53, %51 : vector<8x32xf32>
    %55 = arith.mulf %54, %2 : vector<8x32xf32>
    %56 = arith.addf %52, %55 : vector<8x32xf32>
    %c0_31 = arith.constant 0 : index
    %c0_32 = arith.constant 0 : index
    %c0_33 = arith.constant 0 : index
    %57 = vector.load %arg7[%c0_31, %c0_32, %c0_33] : memref<3x8x32xf32, #tpu.memory_space<vmem>>, vector<1x8x32xf32>
    %58 = vector.shape_cast %57 : vector<1x8x32xf32> to vector<8x32xf32>
    %59 = vector.shape_cast %56 : vector<8x32xf32> to vector<1x8x32xf32>
    tpu.vector_store %arg7[%c0_31, %c0_32, %c0_33], %59 {strides = array<i32>} : memref<3x8x32xf32, #tpu.memory_space<vmem>>, vector<1x8x32xf32>,
    %60 = arith.addf %18, %20 : vector<8x32xf32>
    %cst_34 = arith.constant 2.000000e-01 : f32
    %61 = vector.broadcast %cst_34 : f32 to vector<8x32xf32>
    %62 = arith.mulf %60, %61 : vector<8x32xf32>
    %63 = math.tanh %62 : vector<8x32xf32>
    %cst_35 = arith.constant 5.000000e+00 : f32
    %64 = vector.broadcast %cst_35 : f32 to vector<8x32xf32>
    %65 = arith.mulf %64, %63 : vector<8x32xf32>
    %66 = math.exp %65 : vector<8x32xf32>
    %67 = arith.mulf %4, %66 : vector<8x32xf32>
    %68 = arith.divf %67, %66 : vector<8x32xf32>
    %c0_36 = arith.constant 0 : index
    %c0_37 = arith.constant 0 : index
    %69 = vector.load %arg4[%c0_36, %c0_37] : memref<32x32xf32, #tpu.memory_space<vmem>>, vector<32x32xf32>
    %cst_38 = arith.constant dense<0.000000e+00> : vector<8x32xf32>
    %70 = tpu.matmul %68, %69, %cst_38 {dimension_numbers = #tpu.dot_dimension_numbers<[1], [0], [0], [1], [0, 0, 1, 1], [], []>} : vector<8x32xf32>, vector<32x32xf32>, vector<8x32xf32> -> vector<8x32xf32>
    %c0_39 = arith.constant 0 : index
    %c0_40 = arith.constant 0 : index
    %71 = vector.load %arg5[%c0_39, %c0_40] : memref<32x32xf32, #tpu.memory_space<vmem>>, vector<32x32xf32>
    %cst_41 = arith.constant dense<0.000000e+00> : vector<8x32xf32>
    %72 = tpu.matmul %4, %71, %cst_41 {dimension_numbers = #tpu.dot_dimension_numbers<[1], [0], [0], [1], [0, 0, 1, 1], [], []>} : vector<8x32xf32>, vector<32x32xf32>, vector<8x32xf32> -> vector<8x32xf32>
    %73 = arith.addf %70, %72 : vector<8x32xf32>
    %c0_42 = arith.constant 0 : index
    %c0_43 = arith.constant 0 : index
    %74 = vector.load %arg6[%c0_42, %c0_43] : memref<1x32xf32, #tpu.memory_space<vmem>>, vector<1x32xf32>
    %75 = vector.broadcast %74 : vector<1x32xf32> to vector<8x32xf32>
    %76 = arith.addf %73, %75 : vector<8x32xf32>
    %cst_44 = arith.constant 0.000000e+00 : f32
    %77 = vector.broadcast %cst_44 : f32 to vector<8x32xf32>
    %78 = arith.subf %77, %76 : vector<8x32xf32>
    %79 = math.exp %78 : vector<8x32xf32>
    %cst_45 = arith.constant 1.000000e+00 : f32
    %80 = vector.broadcast %cst_45 : f32 to vector<8x32xf32>
    %81 = arith.addf %80, %79 : vector<8x32xf32>
    %82 = tpu.reciprocal %81 {approx = true} : vector<8x32xf32> -> vector<8x32xf32>
    %83 = arith.mulf %82, %68 : vector<8x32xf32>
    %cst_46 = arith.constant 1.000000e+00 : f32
    %84 = vector.broadcast %cst_46 : f32 to vector<8x32xf32>
    %85 = arith.subf %84, %82 : vector<8x32xf32>
    %86 = arith.mulf %85, %4 : vector<8x32xf32>
    %87 = arith.addf %83, %86 : vector<8x32xf32>
    %c1_47 = arith.constant 1 : index
    %c0_48 = arith.constant 0 : index
    %c0_49 = arith.constant 0 : index
    %88 = vector.load %arg7[%c1_47, %c0_48, %c0_49] : memref<3x8x32xf32, #tpu.memory_space<vmem>>, vector<1x8x32xf32>
    %89 = vector.shape_cast %88 : vector<1x8x32xf32> to vector<8x32xf32>
    %90 = vector.shape_cast %87 : vector<8x32xf32> to vector<1x8x32xf32>
    tpu.vector_store %arg7[%c1_47, %c0_48, %c0_49], %90 {strides = array<i32>} : memref<3x8x32xf32, #tpu.memory_space<vmem>>, vector<1x8x32xf32>,
    %cst_50 = arith.constant 0.000000e+00 : f32
    %91 = vector.broadcast %cst_50 : f32 to vector<8x32xf32>
    %c0_51 = arith.constant 0 : index
    %c0_52 = arith.constant 0 : index
    %92 = vector.load %arg4[%c0_51, %c0_52] : memref<32x32xf32, #tpu.memory_space<vmem>>, vector<32x32xf32>
    %cst_53 = arith.constant dense<0.000000e+00> : vector<8x32xf32>
    %93 = tpu.matmul %91, %92, %cst_53 {dimension_numbers = #tpu.dot_dimension_numbers<[1], [0], [0], [1], [0, 0, 1, 1], [], []>} : vector<8x32xf32>, vector<32x32xf32>, vector<8x32xf32> -> vector<8x32xf32>
    %c0_54 = arith.constant 0 : index
    %c0_55 = arith.constant 0 : index
    %94 = vector.load %arg5[%c0_54, %c0_55] : memref<32x32xf32, #tpu.memory_space<vmem>>, vector<32x32xf32>
    %cst_56 = arith.constant dense<0.000000e+00> : vector<8x32xf32>
    %95 = tpu.matmul %6, %94, %cst_56 {dimension_numbers = #tpu.dot_dimension_numbers<[1], [0], [0], [1], [0, 0, 1, 1], [], []>} : vector<8x32xf32>, vector<32x32xf32>, vector<8x32xf32> -> vector<8x32xf32>
    %96 = arith.addf %93, %95 : vector<8x32xf32>
    %c0_57 = arith.constant 0 : index
    %c0_58 = arith.constant 0 : index
    %97 = vector.load %arg6[%c0_57, %c0_58] : memref<1x32xf32, #tpu.memory_space<vmem>>, vector<1x32xf32>
    %98 = vector.broadcast %97 : vector<1x32xf32> to vector<8x32xf32>
    %99 = arith.addf %96, %98 : vector<8x32xf32>
    %cst_59 = arith.constant 0.000000e+00 : f32
    %100 = vector.broadcast %cst_59 : f32 to vector<8x32xf32>
    %101 = arith.subf %100, %99 : vector<8x32xf32>
    %102 = math.exp %101 : vector<8x32xf32>
    %cst_60 = arith.constant 1.000000e+00 : f32
    %103 = vector.broadcast %cst_60 : f32 to vector<8x32xf32>
    %104 = arith.addf %103, %102 : vector<8x32xf32>
    %105 = tpu.reciprocal %104 {approx = true} : vector<8x32xf32> -> vector<8x32xf32>
    %106 = arith.mulf %105, %91 : vector<8x32xf32>
    %cst_61 = arith.constant 1.000000e+00 : f32
    %107 = vector.broadcast %cst_61 : f32 to vector<8x32xf32>
    %108 = arith.subf %107, %105 : vector<8x32xf32>
    %109 = arith.mulf %108, %6 : vector<8x32xf32>
    %110 = arith.addf %106, %109 : vector<8x32xf32>
    %c2_62 = arith.constant 2 : index
    %c0_63 = arith.constant 0 : index
    %c0_64 = arith.constant 0 : index
    %111 = vector.load %arg7[%c2_62, %c0_63, %c0_64] : memref<3x8x32xf32, #tpu.memory_space<vmem>>, vector<1x8x32xf32>
    %112 = vector.shape_cast %111 : vector<1x8x32xf32> to vector<8x32xf32>
    %113 = vector.shape_cast %110 : vector<8x32xf32> to vector<1x8x32xf32>
    tpu.vector_store %arg7[%c2_62, %c0_63, %c0_64], %113 {strides = array<i32>} : memref<3x8x32xf32, #tpu.memory_space<vmem>>, vector<1x8x32xf32>,
    return
  }
  func.func @transform_0(%arg0: i32) -> (i32, i32, i32) {
    %c0_i32 = arith.constant 0 : i32
    %c0_i32_0 = arith.constant 0 : i32
    %c0_i32_1 = arith.constant 0 : i32
    return %c0_i32, %arg0, %c0_i32_0 : i32, i32, i32
  }
  func.func @transform_1(%arg0: i32) -> (i32, i32) {
    %c0_i32 = arith.constant 0 : i32
    %c0_i32_0 = arith.constant 0 : i32
    %c0_i32_1 = arith.constant 0 : i32
    return %c0_i32, %c0_i32_0 : i32, i32
  }
  func.func @transform_2(%arg0: i32) -> (i32, i32) {
    %c0_i32 = arith.constant 0 : i32
    %c0_i32_0 = arith.constant 0 : i32
    %c0_i32_1 = arith.constant 0 : i32
    return %c0_i32, %c0_i32_0 : i32, i32
  }
  func.func @transform_3(%arg0: i32) -> (i32, i32) {
    %c0_i32 = arith.constant 0 : i32
    %c0_i32_0 = arith.constant 0 : i32
    %c0_i32_1 = arith.constant 0 : i32
    return %c0_i32, %c0_i32_0 : i32, i32
  }
  func.func @transform_4(%arg0: i32) -> (i32, i32) {
    %c0_i32 = arith.constant 0 : i32
    %c0_i32_0 = arith.constant 0 : i32
    %c0_i32_1 = arith.constant 0 : i32
    return %c0_i32, %c0_i32_0 : i32, i32
  }
  func.func @transform_5(%arg0: i32) -> (i32, i32) {
    %c0_i32 = arith.constant 0 : i32
    %c0_i32_0 = arith.constant 0 : i32
    %c0_i32_1 = arith.constant 0 : i32
    return %c0_i32, %c0_i32_0 : i32, i32
  }
  func.func @transform_6(%arg0: i32) -> (i32, i32, i32) {
    %c0_i32 = arith.constant 0 : i32
    %c0_i32_0 = arith.constant 0 : i32
    %c0_i32_1 = arith.constant 0 : i32
    return %c0_i32, %arg0, %c0_i32_0 : i32, i32, i32
  }
}

module attributes {stable_mosaic.version = 11 : i64} {
  func.func @_stage1_kernel(%arg0: i32, %arg1: memref<4x8x32xf32, #tpu.memory_space<vmem>>, %arg2: memref<32x64xf32, #tpu.memory_space<vmem>>, %arg3: memref<1x32xf32, #tpu.memory_space<vmem>>, %arg4: memref<32x32xf32, #tpu.memory_space<vmem>>, %arg5: memref<1x32xf32, #tpu.memory_space<vmem>>, %arg6: memref<32x32xf32, #tpu.memory_space<vmem>>, %arg7: memref<1x32xf32, #tpu.memory_space<vmem>>, %arg8: memref<4x8x32xf32, #tpu.memory_space<vmem>>, %arg9: memref<8x32xf32, #tpu.memory_space<vmem>>) attributes {dimension_semantics = [#tpu.dimension_semantics<parallel>], iteration_bounds = array<i64: 1>, scalar_prefetch = 0 : i64, scratch_operands = 0 : i64, tpu.core_type = #tpu.core_type<tc>, window_params = [{transform_indices = @transform_0, window_bounds = array<i64: 4, 8, 32>}, {pipeline_mode = #tpu.pipeline_mode<synchronous>, transform_indices = @transform_1, window_bounds = array<i64: 32, 64>}, {pipeline_mode = #tpu.pipeline_mode<synchronous>, transform_indices = @transform_2, window_bounds = array<i64: 1, 32>}, {pipeline_mode = #tpu.pipeline_mode<synchronous>, transform_indices = @transform_3, window_bounds = array<i64: 32, 32>}, {pipeline_mode = #tpu.pipeline_mode<synchronous>, transform_indices = @transform_4, window_bounds = array<i64: 1, 32>}, {pipeline_mode = #tpu.pipeline_mode<synchronous>, transform_indices = @transform_5, window_bounds = array<i64: 32, 32>}, {pipeline_mode = #tpu.pipeline_mode<synchronous>, transform_indices = @transform_6, window_bounds = array<i64: 1, 32>}, {transform_indices = @transform_7, window_bounds = array<i64: 4, 8, 32>}, {transform_indices = @transform_8, window_bounds = array<i64: 8, 32>}]} {
    %c0 = arith.constant 0 : index
    %c0_0 = arith.constant 0 : index
    %0 = vector.load %arg3[%c0, %c0_0] : memref<1x32xf32, #tpu.memory_space<vmem>>, vector<1x32xf32>
    %c0_1 = arith.constant 0 : index
    %c0_2 = arith.constant 0 : index
    %c0_3 = arith.constant 0 : index
    %1 = vector.load %arg1[%c0_1, %c0_2, %c0_3] : memref<4x8x32xf32, #tpu.memory_space<vmem>>, vector<1x8x32xf32>
    %2 = vector.shape_cast %1 : vector<1x8x32xf32> to vector<8x32xf32>
    %c1 = arith.constant 1 : index
    %c0_4 = arith.constant 0 : index
    %c0_5 = arith.constant 0 : index
    %3 = vector.load %arg1[%c1, %c0_4, %c0_5] : memref<4x8x32xf32, #tpu.memory_space<vmem>>, vector<1x8x32xf32>
    %4 = vector.shape_cast %3 : vector<1x8x32xf32> to vector<8x32xf32>
    %c2 = arith.constant 2 : index
    %c0_6 = arith.constant 0 : index
    %c0_7 = arith.constant 0 : index
    %5 = vector.load %arg1[%c2, %c0_6, %c0_7] : memref<4x8x32xf32, #tpu.memory_space<vmem>>, vector<1x8x32xf32>
    %6 = vector.shape_cast %5 : vector<1x8x32xf32> to vector<8x32xf32>
    %c3 = arith.constant 3 : index
    %c0_8 = arith.constant 0 : index
    %c0_9 = arith.constant 0 : index
    %7 = vector.load %arg1[%c3, %c0_8, %c0_9] : memref<4x8x32xf32, #tpu.memory_space<vmem>>, vector<1x8x32xf32>
    %8 = vector.shape_cast %7 : vector<1x8x32xf32> to vector<8x32xf32>
    %c0_10 = arith.constant 0 : index
    %c0_11 = arith.constant 0 : index
    %9 = vector.load %arg2[%c0_10, %c0_11] : memref<32x64xf32, #tpu.memory_space<vmem>>, vector<32x64xf32>
    %cst = arith.constant dense<0.000000e+00> : vector<8x64xf32>
    %10 = tpu.matmul %2, %9, %cst {dimension_numbers = #tpu.dot_dimension_numbers<[1], [0], [0], [1], [0, 0, 1, 1], [], []>} : vector<8x32xf32>, vector<32x64xf32>, vector<8x64xf32> -> vector<8x64xf32>
    %c0_12 = arith.constant 0 : index
    %c0_13 = arith.constant 0 : index
    %11 = vector.load %arg2[%c0_12, %c0_13] : memref<32x64xf32, #tpu.memory_space<vmem>>, vector<32x64xf32>
    %cst_14 = arith.constant dense<0.000000e+00> : vector<8x64xf32>
    %12 = tpu.matmul %4, %11, %cst_14 {dimension_numbers = #tpu.dot_dimension_numbers<[1], [0], [0], [1], [0, 0, 1, 1], [], []>} : vector<8x32xf32>, vector<32x64xf32>, vector<8x64xf32> -> vector<8x64xf32>
    %c0_15 = arith.constant 0 : index
    %c0_16 = arith.constant 0 : index
    %13 = vector.load %arg2[%c0_15, %c0_16] : memref<32x64xf32, #tpu.memory_space<vmem>>, vector<32x64xf32>
    %cst_17 = arith.constant dense<0.000000e+00> : vector<8x64xf32>
    %14 = tpu.matmul %6, %13, %cst_17 {dimension_numbers = #tpu.dot_dimension_numbers<[1], [0], [0], [1], [0, 0, 1, 1], [], []>} : vector<8x32xf32>, vector<32x64xf32>, vector<8x64xf32> -> vector<8x64xf32>
    %c0_18 = arith.constant 0 : index
    %c0_19 = arith.constant 0 : index
    %15 = vector.load %arg2[%c0_18, %c0_19] : memref<32x64xf32, #tpu.memory_space<vmem>>, vector<32x64xf32>
    %cst_20 = arith.constant dense<0.000000e+00> : vector<8x64xf32>
    %16 = tpu.matmul %8, %15, %cst_20 {dimension_numbers = #tpu.dot_dimension_numbers<[1], [0], [0], [1], [0, 0, 1, 1], [], []>} : vector<8x32xf32>, vector<32x64xf32>, vector<8x64xf32> -> vector<8x64xf32>
    %17 = vector.extract_strided_slice %10 {offsets = [0, 0], sizes = [8, 32], strides = [1, 1]} : vector<8x64xf32> to vector<8x32xf32>
    %18 = vector.broadcast %0 : vector<1x32xf32> to vector<8x32xf32>
    %19 = arith.addf %17, %18 : vector<8x32xf32>
    %20 = vector.extract_strided_slice %12 {offsets = [0, 0], sizes = [8, 32], strides = [1, 1]} : vector<8x64xf32> to vector<8x32xf32>
    %21 = vector.broadcast %0 : vector<1x32xf32> to vector<8x32xf32>
    %22 = arith.addf %20, %21 : vector<8x32xf32>
    %23 = vector.extract_strided_slice %14 {offsets = [0, 0], sizes = [8, 32], strides = [1, 1]} : vector<8x64xf32> to vector<8x32xf32>
    %24 = vector.broadcast %0 : vector<1x32xf32> to vector<8x32xf32>
    %25 = arith.addf %23, %24 : vector<8x32xf32>
    %26 = vector.extract_strided_slice %12 {offsets = [0, 32], sizes = [8, 32], strides = [1, 1]} : vector<8x64xf32> to vector<8x32xf32>
    %27 = vector.extract_strided_slice %14 {offsets = [0, 32], sizes = [8, 32], strides = [1, 1]} : vector<8x64xf32> to vector<8x32xf32>
    %28 = vector.extract_strided_slice %16 {offsets = [0, 32], sizes = [8, 32], strides = [1, 1]} : vector<8x64xf32> to vector<8x32xf32>
    %29 = arith.addf %19, %26 : vector<8x32xf32>
    %cst_21 = arith.constant 2.000000e-01 : f32
    %30 = vector.broadcast %cst_21 : f32 to vector<8x32xf32>
    %31 = arith.mulf %29, %30 : vector<8x32xf32>
    %32 = math.tanh %31 : vector<8x32xf32>
    %cst_22 = arith.constant 5.000000e+00 : f32
    %33 = vector.broadcast %cst_22 : f32 to vector<8x32xf32>
    %34 = arith.mulf %33, %32 : vector<8x32xf32>
    %35 = math.exp %34 : vector<8x32xf32>
    %36 = arith.addf %19, %27 : vector<8x32xf32>
    %cst_23 = arith.constant 2.000000e-01 : f32
    %37 = vector.broadcast %cst_23 : f32 to vector<8x32xf32>
    %38 = arith.mulf %36, %37 : vector<8x32xf32>
    %39 = math.tanh %38 : vector<8x32xf32>
    %cst_24 = arith.constant 5.000000e+00 : f32
    %40 = vector.broadcast %cst_24 : f32 to vector<8x32xf32>
    %41 = arith.mulf %40, %39 : vector<8x32xf32>
    %42 = math.exp %41 : vector<8x32xf32>
    %43 = arith.addf %35, %42 : vector<8x32xf32>
    %44 = arith.addf %19, %28 : vector<8x32xf32>
    %cst_25 = arith.constant 2.000000e-01 : f32
    %45 = vector.broadcast %cst_25 : f32 to vector<8x32xf32>
    %46 = arith.mulf %44, %45 : vector<8x32xf32>
    %47 = math.tanh %46 : vector<8x32xf32>
    %cst_26 = arith.constant 5.000000e+00 : f32
    %48 = vector.broadcast %cst_26 : f32 to vector<8x32xf32>
    %49 = arith.mulf %48, %47 : vector<8x32xf32>
    %50 = math.exp %49 : vector<8x32xf32>
    %51 = arith.addf %43, %50 : vector<8x32xf32>
    %52 = arith.mulf %2, %51 : vector<8x32xf32>
    %53 = arith.divf %52, %51 : vector<8x32xf32>
    %c0_27 = arith.constant 0 : index
    %c0_28 = arith.constant 0 : index
    %c0_29 = arith.constant 0 : index
    %54 = vector.load %arg8[%c0_27, %c0_28, %c0_29] : memref<4x8x32xf32, #tpu.memory_space<vmem>>, vector<1x8x32xf32>
    %55 = vector.shape_cast %54 : vector<1x8x32xf32> to vector<8x32xf32>
    %56 = vector.shape_cast %53 : vector<8x32xf32> to vector<1x8x32xf32>
    tpu.vector_store %arg8[%c0_27, %c0_28, %c0_29], %56 {strides = array<i32>} : memref<4x8x32xf32, #tpu.memory_space<vmem>>, vector<1x8x32xf32>,
    %57 = arith.addf %22, %27 : vector<8x32xf32>
    %cst_30 = arith.constant 2.000000e-01 : f32
    %58 = vector.broadcast %cst_30 : f32 to vector<8x32xf32>
    %59 = arith.mulf %57, %58 : vector<8x32xf32>
    %60 = math.tanh %59 : vector<8x32xf32>
    %cst_31 = arith.constant 5.000000e+00 : f32
    %61 = vector.broadcast %cst_31 : f32 to vector<8x32xf32>
    %62 = arith.mulf %61, %60 : vector<8x32xf32>
    %63 = math.exp %62 : vector<8x32xf32>
    %64 = arith.addf %22, %28 : vector<8x32xf32>
    %cst_32 = arith.constant 2.000000e-01 : f32
    %65 = vector.broadcast %cst_32 : f32 to vector<8x32xf32>
    %66 = arith.mulf %64, %65 : vector<8x32xf32>
    %67 = math.tanh %66 : vector<8x32xf32>
    %cst_33 = arith.constant 5.000000e+00 : f32
    %68 = vector.broadcast %cst_33 : f32 to vector<8x32xf32>
    %69 = arith.mulf %68, %67 : vector<8x32xf32>
    %70 = math.exp %69 : vector<8x32xf32>
    %71 = arith.addf %63, %70 : vector<8x32xf32>
    %72 = arith.mulf %4, %71 : vector<8x32xf32>
    %73 = arith.divf %72, %71 : vector<8x32xf32>
    %c1_34 = arith.constant 1 : index
    %c0_35 = arith.constant 0 : index
    %c0_36 = arith.constant 0 : index
    %74 = vector.load %arg8[%c1_34, %c0_35, %c0_36] : memref<4x8x32xf32, #tpu.memory_space<vmem>>, vector<1x8x32xf32>
    %75 = vector.shape_cast %74 : vector<1x8x32xf32> to vector<8x32xf32>
    %76 = vector.shape_cast %73 : vector<8x32xf32> to vector<1x8x32xf32>
    tpu.vector_store %arg8[%c1_34, %c0_35, %c0_36], %76 {strides = array<i32>} : memref<4x8x32xf32, #tpu.memory_space<vmem>>, vector<1x8x32xf32>,
    %77 = arith.addf %25, %28 : vector<8x32xf32>
    %cst_37 = arith.constant 2.000000e-01 : f32
    %78 = vector.broadcast %cst_37 : f32 to vector<8x32xf32>
    %79 = arith.mulf %77, %78 : vector<8x32xf32>
    %80 = math.tanh %79 : vector<8x32xf32>
    %cst_38 = arith.constant 5.000000e+00 : f32
    %81 = vector.broadcast %cst_38 : f32 to vector<8x32xf32>
    %82 = arith.mulf %81, %80 : vector<8x32xf32>
    %83 = math.exp %82 : vector<8x32xf32>
    %84 = arith.mulf %6, %83 : vector<8x32xf32>
    %85 = arith.divf %84, %83 : vector<8x32xf32>
    %c2_39 = arith.constant 2 : index
    %c0_40 = arith.constant 0 : index
    %c0_41 = arith.constant 0 : index
    %86 = vector.load %arg8[%c2_39, %c0_40, %c0_41] : memref<4x8x32xf32, #tpu.memory_space<vmem>>, vector<1x8x32xf32>
    %87 = vector.shape_cast %86 : vector<1x8x32xf32> to vector<8x32xf32>
    %88 = vector.shape_cast %85 : vector<8x32xf32> to vector<1x8x32xf32>
    tpu.vector_store %arg8[%c2_39, %c0_40, %c0_41], %88 {strides = array<i32>} : memref<4x8x32xf32, #tpu.memory_space<vmem>>, vector<1x8x32xf32>,
    %cst_42 = arith.constant 0.000000e+00 : f32
    %89 = vector.broadcast %cst_42 : f32 to vector<8x32xf32>
    %c3_43 = arith.constant 3 : index
    %c0_44 = arith.constant 0 : index
    %c0_45 = arith.constant 0 : index
    %90 = vector.load %arg8[%c3_43, %c0_44, %c0_45] : memref<4x8x32xf32, #tpu.memory_space<vmem>>, vector<1x8x32xf32>
    %91 = vector.shape_cast %90 : vector<1x8x32xf32> to vector<8x32xf32>
    %92 = vector.shape_cast %89 : vector<8x32xf32> to vector<1x8x32xf32>
    tpu.vector_store %arg8[%c3_43, %c0_44, %c0_45], %92 {strides = array<i32>} : memref<4x8x32xf32, #tpu.memory_space<vmem>>, vector<1x8x32xf32>,
    %c0_46 = arith.constant 0 : index
    %c0_47 = arith.constant 0 : index
    %93 = vector.load %arg4[%c0_46, %c0_47] : memref<32x32xf32, #tpu.memory_space<vmem>>, vector<32x32xf32>
    %cst_48 = arith.constant dense<0.000000e+00> : vector<8x32xf32>
    %94 = tpu.matmul %53, %93, %cst_48 {dimension_numbers = #tpu.dot_dimension_numbers<[1], [0], [0], [1], [0, 0, 1, 1], [], []>} : vector<8x32xf32>, vector<32x32xf32>, vector<8x32xf32> -> vector<8x32xf32>
    %c0_49 = arith.constant 0 : index
    %c0_50 = arith.constant 0 : index
    %95 = vector.load %arg5[%c0_49, %c0_50] : memref<1x32xf32, #tpu.memory_space<vmem>>, vector<1x32xf32>
    %96 = vector.broadcast %95 : vector<1x32xf32> to vector<8x32xf32>
    %97 = arith.addf %94, %96 : vector<8x32xf32>
    %cst_51 = arith.constant 0.000000e+00 : f32
    %98 = vector.broadcast %cst_51 : f32 to vector<8x32xf32>
    %99 = arith.maximumf %97, %98 : vector<8x32xf32>
    %c0_52 = arith.constant 0 : index
    %c0_53 = arith.constant 0 : index
    %100 = vector.load %arg6[%c0_52, %c0_53] : memref<32x32xf32, #tpu.memory_space<vmem>>, vector<32x32xf32>
    %cst_54 = arith.constant dense<0.000000e+00> : vector<8x32xf32>
    %101 = tpu.matmul %99, %100, %cst_54 {dimension_numbers = #tpu.dot_dimension_numbers<[1], [0], [0], [1], [0, 0, 1, 1], [], []>} : vector<8x32xf32>, vector<32x32xf32>, vector<8x32xf32> -> vector<8x32xf32>
    %c0_55 = arith.constant 0 : index
    %c0_56 = arith.constant 0 : index
    %102 = vector.load %arg7[%c0_55, %c0_56] : memref<1x32xf32, #tpu.memory_space<vmem>>, vector<1x32xf32>
    %103 = vector.broadcast %102 : vector<1x32xf32> to vector<8x32xf32>
    %104 = arith.addf %101, %103 : vector<8x32xf32>
    %c0_57 = arith.constant 0 : index
    %c0_58 = arith.constant 0 : index
    %105 = vector.load %arg4[%c0_57, %c0_58] : memref<32x32xf32, #tpu.memory_space<vmem>>, vector<32x32xf32>
    %cst_59 = arith.constant dense<0.000000e+00> : vector<8x32xf32>
    %106 = tpu.matmul %73, %105, %cst_59 {dimension_numbers = #tpu.dot_dimension_numbers<[1], [0], [0], [1], [0, 0, 1, 1], [], []>} : vector<8x32xf32>, vector<32x32xf32>, vector<8x32xf32> -> vector<8x32xf32>
    %c0_60 = arith.constant 0 : index
    %c0_61 = arith.constant 0 : index
    %107 = vector.load %arg5[%c0_60, %c0_61] : memref<1x32xf32, #tpu.memory_space<vmem>>, vector<1x32xf32>
    %108 = vector.broadcast %107 : vector<1x32xf32> to vector<8x32xf32>
    %109 = arith.addf %106, %108 : vector<8x32xf32>
    %cst_62 = arith.constant 0.000000e+00 : f32
    %110 = vector.broadcast %cst_62 : f32 to vector<8x32xf32>
    %111 = arith.maximumf %109, %110 : vector<8x32xf32>
    %c0_63 = arith.constant 0 : index
    %c0_64 = arith.constant 0 : index
    %112 = vector.load %arg6[%c0_63, %c0_64] : memref<32x32xf32, #tpu.memory_space<vmem>>, vector<32x32xf32>
    %cst_65 = arith.constant dense<0.000000e+00> : vector<8x32xf32>
    %113 = tpu.matmul %111, %112, %cst_65 {dimension_numbers = #tpu.dot_dimension_numbers<[1], [0], [0], [1], [0, 0, 1, 1], [], []>} : vector<8x32xf32>, vector<32x32xf32>, vector<8x32xf32> -> vector<8x32xf32>
    %c0_66 = arith.constant 0 : index
    %c0_67 = arith.constant 0 : index
    %114 = vector.load %arg7[%c0_66, %c0_67] : memref<1x32xf32, #tpu.memory_space<vmem>>, vector<1x32xf32>
    %115 = vector.broadcast %114 : vector<1x32xf32> to vector<8x32xf32>
    %116 = arith.addf %113, %115 : vector<8x32xf32>
    %c0_68 = arith.constant 0 : index
    %c0_69 = arith.constant 0 : index
    %117 = vector.load %arg4[%c0_68, %c0_69] : memref<32x32xf32, #tpu.memory_space<vmem>>, vector<32x32xf32>
    %cst_70 = arith.constant dense<0.000000e+00> : vector<8x32xf32>
    %118 = tpu.matmul %85, %117, %cst_70 {dimension_numbers = #tpu.dot_dimension_numbers<[1], [0], [0], [1], [0, 0, 1, 1], [], []>} : vector<8x32xf32>, vector<32x32xf32>, vector<8x32xf32> -> vector<8x32xf32>
    %c0_71 = arith.constant 0 : index
    %c0_72 = arith.constant 0 : index
    %119 = vector.load %arg5[%c0_71, %c0_72] : memref<1x32xf32, #tpu.memory_space<vmem>>, vector<1x32xf32>
    %120 = vector.broadcast %119 : vector<1x32xf32> to vector<8x32xf32>
    %121 = arith.addf %118, %120 : vector<8x32xf32>
    %cst_73 = arith.constant 0.000000e+00 : f32
    %122 = vector.broadcast %cst_73 : f32 to vector<8x32xf32>
    %123 = arith.maximumf %121, %122 : vector<8x32xf32>
    %c0_74 = arith.constant 0 : index
    %c0_75 = arith.constant 0 : index
    %124 = vector.load %arg6[%c0_74, %c0_75] : memref<32x32xf32, #tpu.memory_space<vmem>>, vector<32x32xf32>
    %cst_76 = arith.constant dense<0.000000e+00> : vector<8x32xf32>
    %125 = tpu.matmul %123, %124, %cst_76 {dimension_numbers = #tpu.dot_dimension_numbers<[1], [0], [0], [1], [0, 0, 1, 1], [], []>} : vector<8x32xf32>, vector<32x32xf32>, vector<8x32xf32> -> vector<8x32xf32>
    %c0_77 = arith.constant 0 : index
    %c0_78 = arith.constant 0 : index
    %126 = vector.load %arg7[%c0_77, %c0_78] : memref<1x32xf32, #tpu.memory_space<vmem>>, vector<1x32xf32>
    %127 = vector.broadcast %126 : vector<1x32xf32> to vector<8x32xf32>
    %128 = arith.addf %125, %127 : vector<8x32xf32>
    %c0_79 = arith.constant 0 : index
    %c0_80 = arith.constant 0 : index
    %129 = vector.load %arg4[%c0_79, %c0_80] : memref<32x32xf32, #tpu.memory_space<vmem>>, vector<32x32xf32>
    %cst_81 = arith.constant dense<0.000000e+00> : vector<8x32xf32>
    %130 = tpu.matmul %89, %129, %cst_81 {dimension_numbers = #tpu.dot_dimension_numbers<[1], [0], [0], [1], [0, 0, 1, 1], [], []>} : vector<8x32xf32>, vector<32x32xf32>, vector<8x32xf32> -> vector<8x32xf32>
    %c0_82 = arith.constant 0 : index
    %c0_83 = arith.constant 0 : index
    %131 = vector.load %arg5[%c0_82, %c0_83] : memref<1x32xf32, #tpu.memory_space<vmem>>, vector<1x32xf32>
    %132 = vector.broadcast %131 : vector<1x32xf32> to vector<8x32xf32>
    %133 = arith.addf %130, %132 : vector<8x32xf32>
    %cst_84 = arith.constant 0.000000e+00 : f32
    %134 = vector.broadcast %cst_84 : f32 to vector<8x32xf32>
    %135 = arith.maximumf %133, %134 : vector<8x32xf32>
    %c0_85 = arith.constant 0 : index
    %c0_86 = arith.constant 0 : index
    %136 = vector.load %arg6[%c0_85, %c0_86] : memref<32x32xf32, #tpu.memory_space<vmem>>, vector<32x32xf32>
    %cst_87 = arith.constant dense<0.000000e+00> : vector<8x32xf32>
    %137 = tpu.matmul %135, %136, %cst_87 {dimension_numbers = #tpu.dot_dimension_numbers<[1], [0], [0], [1], [0, 0, 1, 1], [], []>} : vector<8x32xf32>, vector<32x32xf32>, vector<8x32xf32> -> vector<8x32xf32>
    %c0_88 = arith.constant 0 : index
    %c0_89 = arith.constant 0 : index
    %138 = vector.load %arg7[%c0_88, %c0_89] : memref<1x32xf32, #tpu.memory_space<vmem>>, vector<1x32xf32>
    %139 = vector.broadcast %138 : vector<1x32xf32> to vector<8x32xf32>
    %140 = arith.addf %137, %139 : vector<8x32xf32>
    %141 = arith.maximumf %104, %116 : vector<8x32xf32>
    %142 = arith.maximumf %141, %128 : vector<8x32xf32>
    %143 = arith.maximumf %142, %140 : vector<8x32xf32>
    %144 = arith.subf %104, %143 : vector<8x32xf32>
    %145 = math.exp %144 : vector<8x32xf32>
    %146 = arith.mulf %145, %53 : vector<8x32xf32>
    %147 = arith.subf %116, %143 : vector<8x32xf32>
    %148 = math.exp %147 : vector<8x32xf32>
    %149 = arith.addf %145, %148 : vector<8x32xf32>
    %150 = arith.mulf %148, %73 : vector<8x32xf32>
    %151 = arith.addf %146, %150 : vector<8x32xf32>
    %152 = arith.subf %128, %143 : vector<8x32xf32>
    %153 = math.exp %152 : vector<8x32xf32>
    %154 = arith.addf %149, %153 : vector<8x32xf32>
    %155 = arith.mulf %153, %85 : vector<8x32xf32>
    %156 = arith.addf %151, %155 : vector<8x32xf32>
    %157 = arith.subf %140, %143 : vector<8x32xf32>
    %158 = math.exp %157 : vector<8x32xf32>
    %159 = arith.addf %154, %158 : vector<8x32xf32>
    %160 = arith.mulf %158, %89 : vector<8x32xf32>
    %161 = arith.addf %156, %160 : vector<8x32xf32>
    %162 = tpu.reciprocal %159 {approx = true} : vector<8x32xf32> -> vector<8x32xf32>
    %163 = arith.mulf %161, %162 : vector<8x32xf32>
    %c0_90 = arith.constant 0 : index
    %c0_91 = arith.constant 0 : index
    %164 = vector.load %arg9[%c0_90, %c0_91] : memref<8x32xf32, #tpu.memory_space<vmem>>, vector<8x32xf32>
    tpu.vector_store %arg9[%c0_90, %c0_91], %163 {strides = array<i32>} : memref<8x32xf32, #tpu.memory_space<vmem>>, vector<8x32xf32>,
    return
  }
  func.func @transform_0(%arg0: i32) -> (i32, i32, i32) {
    %c0_i32 = arith.constant 0 : i32
    %c0_i32_0 = arith.constant 0 : i32
    %c0_i32_1 = arith.constant 0 : i32
    return %c0_i32, %arg0, %c0_i32_0 : i32, i32, i32
  }
  func.func @transform_1(%arg0: i32) -> (i32, i32) {
    %c0_i32 = arith.constant 0 : i32
    %c0_i32_0 = arith.constant 0 : i32
    %c0_i32_1 = arith.constant 0 : i32
    return %c0_i32, %c0_i32_0 : i32, i32
  }
  func.func @transform_2(%arg0: i32) -> (i32, i32) {
    %c0_i32 = arith.constant 0 : i32
    %c0_i32_0 = arith.constant 0 : i32
    %c0_i32_1 = arith.constant 0 : i32
    return %c0_i32, %c0_i32_0 : i32, i32
  }
  func.func @transform_3(%arg0: i32) -> (i32, i32) {
    %c0_i32 = arith.constant 0 : i32
    %c0_i32_0 = arith.constant 0 : i32
    %c0_i32_1 = arith.constant 0 : i32
    return %c0_i32, %c0_i32_0 : i32, i32
  }
  func.func @transform_4(%arg0: i32) -> (i32, i32) {
    %c0_i32 = arith.constant 0 : i32
    %c0_i32_0 = arith.constant 0 : i32
    %c0_i32_1 = arith.constant 0 : i32
    return %c0_i32, %c0_i32_0 : i32, i32
  }
  func.func @transform_5(%arg0: i32) -> (i32, i32) {
    %c0_i32 = arith.constant 0 : i32
    %c0_i32_0 = arith.constant 0 : i32
    %c0_i32_1 = arith.constant 0 : i32
    return %c0_i32, %c0_i32_0 : i32, i32
  }
  func.func @transform_6(%arg0: i32) -> (i32, i32) {
    %c0_i32 = arith.constant 0 : i32
    %c0_i32_0 = arith.constant 0 : i32
    %c0_i32_1 = arith.constant 0 : i32
    return %c0_i32, %c0_i32_0 : i32, i32
  }
  func.func @transform_7(%arg0: i32) -> (i32, i32, i32) {
    %c0_i32 = arith.constant 0 : i32
    %c0_i32_0 = arith.constant 0 : i32
    %c0_i32_1 = arith.constant 0 : i32
    return %c0_i32, %arg0, %c0_i32_0 : i32, i32, i32
  }
  func.func @transform_8(%arg0: i32) -> (i32, i32) {
    %c0_i32 = arith.constant 0 : i32
    %c0_i32_0 = arith.constant 0 : i32
    return %arg0, %c0_i32 : i32, i32
  }
}

</mosaic_0001>

<bundles_post_ra>
// kernel: mblosa_forward.5
= control target key start
LH: loop header
LB: loop body
LE: loop exit
PB: predicated region body
PF: predicated region fallthrough
CT: control target
= control target key end

     0   :  { %v1024_v0 = vmov 0.0   ;;  %vm1025_vm0 = vmmov 0   ;;  %vm38_vm1 = vcmask 261120   ;;  %s1273_s5 = inlined_call_operand.vmem [shape: f32[32,64], index: 5, kind: input, shape index: {}]   ;;  %s1274_s4 = inlined_call_operand.vmem [shape: f32[32,64], index: 4, kind: input, shape index: {}]   ;;  %s1275_s2 = inlined_call_operand.vmem [shape: f32[8,32], index: 2, kind: input, shape index: {}]   ;;  %s1276_s3 = inlined_call_operand.vmem [shape: f32[32,64], index: 3, kind: input, shape index: {}]   ;;  %s1277_s1 = inlined_call_operand.vmem [shape: f32[4,8,32], index: 1, kind: input, shape index: {}]   ;;  %s1278_s0 = inlined_call_operand.vmem [shape: f32[4,8,32], index: 0, kind: input, shape index: {}]   ;;  %s1279_s6 = inlined_call_operand.vmem [shape: f32[1,64], index: 6, kind: input, shape index: {}]   ;;  %s1280_s7 = inlined_call_operand.vmem [shape: f32[4,8,32], index: 7, kind: output, shape index: {}]  }
   0x1   :  { %905 = vmatprep.subr.mxu0 %v1024_v0  ;;  %v30_v1 = vld [vmem:[%s1273_s5 + $0x18] sm:$0xff]  ;;  %v29_v2 = vld [vmem:[%s1273_s5 + $0x10] sm:$0xff]  ;;  %916 = vmatprep.subr.mxu1 %v1024_v0  ;;  %v28_v4 = vld [vmem:[%s1273_s5 + $0x8] sm:$0xff] }
   0x2   :  { %906 = vmatpush3.msra.mxu0 %v30_v1  ;;  %913 = vmatprep.mubr.msk.f32.mxu0 %vm1025_vm0, %v1024_v0  ;;  %v1081_v3 = vld [vmem:[%s1274_s4 + $0x18] sm:$0xff]  ;;  %v1091_v5 = vld [vmem:[%s1274_s4 + $0x10] sm:$0xff]  ;;  %v1097_v6 = vld [vmem:[%s1274_s4 + $0x8] sm:$0xff] }
   0x3   :  { %907 = vmatprep.subr.mxu0 %v1024_v0  ;;  %917 = vmatpush3.msra.mxu1 %v1081_v3  ;;  %v27_v7 = vld [vmem:[%s1273_s5] sm:$0xff]  ;;  %v1112_v9 = vld [vmem:[%s1276_s3 + $0x18] sm:$0xff]  ;;  %v1126_v11 = vld [vmem:[%s1276_s3 + $0x10] sm:$0xff] }
   0x4   :  { %908 = vmatpush3.msra.mxu0 %v29_v2  ;;  %918 = vmatprep.subr.mxu1 %v1024_v0  ;;  %v26_v8 = vld [vmem:[%s1275_s2] sm:$0xff]  ;;  %v1137_v13 = vld [vmem:[%s1276_s3 + $0x8] sm:$0xff]  ;;  %v851_v18 = vld [vmem:[%s1277_s1 + $0x10] sm:$0xff] }
   0x5   :  { %909 = vmatprep.subr.mxu0 %v1024_v0  ;;  %919 = vmatpush3.msra.mxu1 %v1091_v5  ;;  %v1118_v10 = vld [vmem:[%s1274_s4] sm:$0xff]  ;;  %v846_v16 = vld [vmem:[%s1277_s1 + $0x8] sm:$0xff]  ;;  %v850_v19 = vld [vmem:[%s1278_s0 + $0x10] sm:$0xff] }
   0x6   :  { %910 = vmatpush3.msra.mxu0 %v28_v4  ;;  %920 = vmatprep.subr.mxu1 %v1024_v0  ;;  %v113_v12 = vld [vmem:[%s1277_s1] sm:$0xff]  ;;  %v845_v17 = vld [vmem:[%s1278_s0 + $0x8] sm:$0xff]  ;;  %v856_v20 = vld [vmem:[%s1277_s1 + $0x18] sm:$0xff]  ;;  %s1026_s1 = smov 32  }
   0x7   :  { %911 = vmatprep.subr.mxu0 %v1024_v0  ;;  %921 = vmatpush3.msra.mxu1 %v1097_v6  ;;  %v1148_v14 = vld [vmem:[%s1276_s3] sm:$0xff]  ;;  %v855_v21 = vld [vmem:[%s1278_s0 + $0x18] sm:$0xff] }
   0x8   :  { %912 = vmatpush3.msra.mxu0 %v27_v7  ;;  %922 = vmatprep.subr.mxu1 %v1024_v0  ;;  %v1156_v15 = vld [vmem:[%s1278_s0] sm:$0xff] }
   0x9   :  { %914 = vmatmul.mubr.msk.f32.vlgmr.msra.gmra.mxu0 %vm38_vm1, %v26_v8  ;;  %927 = vmatprep.subr.mxu0 %v1024_v0  ;;  %v841_v25 = vld [vmem:[%s1279_s6] ss:$0 sm:$0xff]  ;;  %s1027_s6 = smov 96  }
   0xa   :  { %928 = vmatpush3.msra.mxu0 %v1112_v9  ;;  %923 = vmatpush3.msra.mxu1 %v1118_v10 }
   0xb   :  { %929 = vmatprep.subr.mxu0 %v1024_v0  ;;  %924 = vmatprep.mubr.msk.f32.mxu1 %vm1025_vm0, %v1024_v0 }
   0xc   :  { %930 = vmatpush3.msra.mxu0 %v1126_v11  ;;  %938 = vmatprep.subr.mxu1 %v1024_v0 }
   0xd   :  { %931 = vmatprep.subr.mxu0 %v1024_v0  ;;  %925 = vmatmul.mubr.msk.f32.vlgmr.msra.gmra.mxu1 %vm38_vm1, %v113_v12 }
   0xe   :  { %932 = vmatpush3.msra.mxu0 %v1137_v13  ;;  %935 = vmatprep.mubr.msk.f32.mxu0 %vm1025_vm0, %v1024_v0 }
   0xf   :  { %933 = vmatprep.subr.mxu0 %v1024_v0  ;;  %939 = vmatpush3.msra.mxu1 %v1081_v3 }
  0x10   :  { %934 = vmatpush3.msra.mxu0 %v1148_v14  ;;  %940 = vmatprep.subr.mxu1 %v1024_v0 }
  0x11   :  { %936 = vmatmul.mubr.msk.f32.vlgmr.msra.gmra.mxu0 %vm38_vm1, %v1156_v15  ;;  %949 = vmatprep.subr.mxu0 %v1024_v0 }
  0x12   :  { %941 = vmatpush3.msra.mxu1 %v1091_v5  ;;  %950 = vmatpush3.msra.mxu0 %v1112_v9 }
  0x13   :  { %942 = vmatprep.subr.mxu1 %v1024_v0  ;;  %951 = vmatprep.subr.mxu0 %v1024_v0 }
  0x14   :  { %943 = vmatpush3.msra.mxu1 %v1097_v6  ;;  %952 = vmatpush3.msra.mxu0 %v1126_v11 }
  0x15   :  { %944 = vmatprep.subr.mxu1 %v1024_v0  ;;  %953 = vmatprep.subr.mxu0 %v1024_v0 }
  0x16   :  { %945 = vmatpush3.msra.mxu1 %v1118_v10  ;;  %954 = vmatpush3.msra.mxu0 %v1137_v13 }
  0x17   :  { %946 = vmatprep.mubr.msk.f32.mxu1 %vm1025_vm0, %v1024_v0  ;;  %955 = vmatprep.subr.mxu0 %v1024_v0 }
  0x18   :  { %960 = vmatprep.subr.mxu1 %v1024_v0  ;;  %947 = vmatmul.mubr.msk.f32.vlgmr.msra.gmra.mxu1 %vm38_vm1, %v846_v16 }
  0x19   :  { %956 = vmatpush3.msra.mxu0 %v1148_v14  ;;  %957 = vmatprep.mubr.msk.f32.mxu0 %vm1025_vm0, %v1024_v0 }
  0x1a   :  { %961 = vmatpush3.msra.mxu1 %v1081_v3  ;;  %958 = vmatmul.mubr.msk.f32.vlgmr.msra.gmra.mxu0 %vm38_vm1, %v845_v17 }
  0x1b   :  { %962 = vmatprep.subr.mxu1 %v1024_v0  ;;  %971 = vmatprep.subr.mxu0 %v1024_v0 }
  0x1c   :  { %963 = vmatpush3.msra.mxu1 %v1091_v5  ;;  %972 = vmatpush3.msra.mxu0 %v1112_v9 }
  0x1d   :  { %964 = vmatprep.subr.mxu1 %v1024_v0  ;;  %973 = vmatprep.subr.mxu0 %v1024_v0 }
  0x1e   :  { %965 = vmatpush3.msra.mxu1 %v1097_v6  ;;  %974 = vmatpush3.msra.mxu0 %v1126_v11 }
  0x1f   :  { %966 = vmatprep.subr.mxu1 %v1024_v0  ;;  %975 = vmatprep.subr.mxu0 %v1024_v0 }
  0x20   :  { %967 = vmatpush3.msra.mxu1 %v1118_v10  ;;  %976 = vmatpush3.msra.mxu0 %v1137_v13 }
  0x21   :  { %968 = vmatprep.mubr.msk.f32.mxu1 %vm1025_vm0, %v1024_v0  ;;  %977 = vmatprep.subr.mxu0 %v1024_v0 }
  0x22   :  { %982 = vmatprep.subr.mxu1 %v1024_v0  ;;  %969 = vmatmul.mubr.msk.f32.vlgmr.msra.gmra.mxu1 %vm38_vm1, %v851_v18 }
  0x23   :  { %978 = vmatpush3.msra.mxu0 %v1148_v14  ;;  %979 = vmatprep.mubr.msk.f32.mxu0 %vm1025_vm0, %v1024_v0 }
  0x24   :  { %983 = vmatpush3.msra.mxu1 %v1081_v3  ;;  %980 = vmatmul.mubr.msk.f32.vlgmr.msra.gmra.mxu0 %vm38_vm1, %v850_v19 }
  0x25   :  { %984 = vmatprep.subr.mxu1 %v1024_v0  ;;  %993 = vmatprep.subr.mxu0 %v1024_v0 }
  0x26   :  { %985 = vmatpush3.msra.mxu1 %v1091_v5  ;;  %994 = vmatpush3.msra.mxu0 %v1112_v9 }
  0x27   :  { %986 = vmatprep.subr.mxu1 %v1024_v0  ;;  %995 = vmatprep.subr.mxu0 %v1024_v0 }
  0x28   :  { %987 = vmatpush3.msra.mxu1 %v1097_v6  ;;  %996 = vmatpush3.msra.mxu0 %v1126_v11 }
  0x29   :  { %988 = vmatprep.subr.mxu1 %v1024_v0  ;;  %997 = vmatprep.subr.mxu0 %v1024_v0 }
  0x2a   :  { %989 = vmatpush3.msra.mxu1 %v1118_v10  ;;  %990 = vmatprep.mubr.msk.f32.mxu1 %vm1025_vm0, %v1024_v0 }
  0x2b   :  { %998 = vmatpush3.msra.mxu0 %v1137_v13  ;;  %991 = vmatmul.mubr.msk.f32.vlgmr.msra.gmra.mxu1 %vm38_vm1, %v856_v20 }
  0x2c   :  { %999 = vmatprep.subr.mxu0 %v1024_v0  ;;  %1001 = vmatprep.mubr.msk.f32.mxu0 %vm1025_vm0, %v1024_v0 }
  0x2d   :  { %1000 = vmatpush3.msra.mxu0 %v1148_v14  ;;  %281 = vrot.lane.b32.xlu0 %v1156_v15, %s1026_s1 }
  0x2e   :  { %1002 = vmatmul.mubr.msk.f32.vlgmr.msra.gmra.mxu0 %vm38_vm1, %v855_v21  ;;  %462 = vrot.lane.b32.xlu1 %v845_v17, %s1026_s1 }
  0x32   :  { %644 = vrot.lane.b32.xlu1 %v850_v19, %s1026_s1 }
  0x9f   :  { %v282_v5 = vpop.permute.xlu0 %281 }
  0xa0   :  { %v463_v9 = vpop.permute.xlu1 %462 }
  0xa4   :  { %v645_v14 = vpop.permute.xlu1 %644 }
  0xc9   :  { %v108_v22 = vpop.f32.mrf.mxu0 }
  0xca   :  { %v109_v28 = vadd.f32 %v841_v25, %v108_v22 }
  0xcb   :  { %v915_v23 = vpop.f32.mrf.mxu0 }
  0xcd   :  { %v191_v24 = vpop.f32.mrf.mxu1 }
  0xcf   :  { %v926_v26 = vpop.f32.mrf.mxu1 }
  0xd1   :  { %v264_v27 = vpop.f32.mrf.mxu0 }
  0xd2   :  { %v265_v29 = vadd.f32 %v264_v27, %v191_v24 }
  0xd3   :  { %v937_v30 = vpop.f32.mrf.mxu0 }
  0xd4   :  { %v268_v31 = vadd.f32 %v265_v29, %v109_v28 }
  0xd6   :  { %v269_v32 = vmax.f32 %v268_v31, 0.0  ;;  %v270_v54 = vsub.f32 0.0, %v268_v31 }
  0xd8   :  { %v372_v33 = vpop.f32.mrf.mxu1  ;;  %276 = vrot.lane.b32.xlu0 %v269_v32, %s1026_s1  ;;  %v271_v55 = vmul.f32 1.442695, %v270_v54 }
  0xda   :  { %v445_v34 = vpop.f32.mrf.mxu0  ;;  %v948_v35 = vpop.f32.mrf.mxu1  ;;  %1008 = vpow2.f32 %v271_v55 }
  0xdb   :  { %v446_v36 = vadd.f32 %v445_v34, %v372_v33 }
  0xdc   :  { %v959_v37 = vpop.f32.mrf.mxu0 }
  0xdd   :  { %v449_v38 = vadd.f32 %v446_v36, %v109_v28 }
  0xdf   :  { %v450_v39 = vmax.f32 %v449_v38, 0.0  ;;  %v451_v56 = vsub.f32 0.0, %v449_v38 }
  0xe1   :  { %457 = vrot.lane.b32.xlu1 %v450_v39, %s1026_s1  ;;  %v452_v57 = vmul.f32 1.442695, %v451_v56 }
  0xe2   :  { %v554_v40 = vpop.f32.mrf.mxu1 }
  0xe3   :  { %1010 = vpow2.f32 %v452_v57 }
  0xe4   :  { %v627_v41 = vpop.f32.mrf.mxu0  ;;  %v970_v42 = vpop.f32.mrf.mxu1 }
  0xe5   :  { %v628_v43 = vadd.f32 %v627_v41, %v554_v40  ;;  %826 = vrot.lane.b32.xlu1 %v855_v21, %s1026_s1 }
  0xe6   :  { %v981_v44 = vpop.f32.mrf.mxu0 }
  0xe7   :  { %v631_v45 = vadd.f32 %v628_v43, %v109_v28  ;;  %v1009_v59 = vpop.eup %1008 }
  0xe8   :  { %v273_v61 = vadd.f32 1.0, %v1009_v59 }
  0xe9   :  { %v632_v46 = vmax.f32 %v631_v45, 0.0  ;;  %v633_v58 = vsub.f32 0.0, %v631_v45 }
  0xeb   :  { %v736_v47 = vpop.f32.mrf.mxu1  ;;  %639 = vrot.lane.b32.xlu0 %v632_v46, %s1026_s1  ;;  %v634_v60 = vmul.f32 1.442695, %v633_v58 }
  0xed   :  { %v992_v48 = vpop.f32.mrf.mxu1  ;;  %1012 = vpow2.f32 %v634_v60 }
  0xee   :  { %v809_v49 = vpop.f32.mrf.mxu0  ;;  %1014 = vrcp.f32 %v273_v61 }
  0xef   :  { %v810_v50 = vadd.f32 %v809_v49, %v736_v47 }
  0xf0   :  { %v1003_v51 = vpop.f32.mrf.mxu0  ;;  %v1011_v62 = vpop.eup %1010 }
  0xf1   :  { %v813_v52 = vadd.f32 %v810_v50, %v109_v28  ;;  %v454_v0 = vadd.f32 1.0, %v1011_v62 }
  0xf3   :  { %v814_v53 = vmax.f32 %v813_v52, 0.0  ;;  %v815_v63 = vsub.f32 0.0, %v813_v52  ;;  %1016 = vrcp.f32 %v454_v0 }
  0xf5   :  { %821 = vrot.lane.b32.xlu0 %v814_v53, %s1026_s1  ;;  %v816_v1 = vmul.f32 1.442695, %v815_v63 }
  0xf7   :  { %1018 = vpow2.f32 %v816_v1 }
  0xfa   :  { %v1013_v2 = vpop.eup %1012 }
  0xfb   :  { %v1015_v3 = vpop.eup %1014  ;;  %v636_v4 = vadd.f32 1.0, %v1013_v2 }
  0xfc   :  { %v280_v6 = vsub.f32 1.0, %v1015_v3 }
  0xfd   :  { %1020 = vrcp.f32 %v636_v4 }
  0xfe   :  { %v284_v8 = vmul.f32 %v282_v5, %v280_v6 }
 0x100   :  { %v1017_v11 = vpop.eup %1016 }
 0x101   :  { %v461_v15 = vsub.f32 1.0, %v1017_v11 }
 0x103   :  { %v465_v18 = vmul.f32 %v463_v9, %v461_v15 }
 0x104   :  { %v1019_v13 = vpop.eup %1018 }
 0x105   :  { %v818_v16 = vadd.f32 1.0, %v1019_v13 }
 0x107   :  { %1022 = vrcp.f32 %v818_v16 }
 0x10a   :  { %v1021_v21 = vpop.eup %1020 }
 0x10b   :  { %v643_v22 = vsub.f32 1.0, %v1021_v21 }
 0x10d   :  { %v647_v24 = vmul.f32 %v645_v14, %v643_v22 }
 0x114   :  { %v1023_v27 = vpop.eup %1022 }
 0x115   :  { %v825_v29 = vsub.f32 1.0, %v1023_v27 }
 0x14a   :  { %v277_v7 = vpop.permute.xlu0 %276 }
 0x14b   :  { %v279_v10 = vmul.f32 %v1015_v3, %v277_v7 }
 0x14d   :  { %v285_v12 = vadd.f32 %v284_v8, %v279_v10 }
 0x14f   :  { %287 = vrot.lane.b32.xlu0 %v285_v12, %s1027_s6 }
 0x153   :  { %v458_v17 = vpop.permute.xlu1 %457 }
 0x154   :  { %v460_v19 = vmul.f32 %v1017_v11, %v458_v17 }
 0x156   :  { %v466_v20 = vadd.f32 %v465_v18, %v460_v19 }
 0x157   :  { %v827_v28 = vpop.permute.xlu1 %826 }
 0x158   :  { %468 = vrot.lane.b32.xlu1 %v466_v20, %s1027_s6  ;;  %v829_v31 = vmul.f32 %v827_v28, %v825_v29 }
 0x15d   :  { %v640_v23 = vpop.permute.xlu0 %639 }
 0x15e   :  { %v642_v25 = vmul.f32 %v1021_v21, %v640_v23 }
 0x160   :  { %v648_v26 = vadd.f32 %v647_v24, %v642_v25 }
 0x162   :  { %650 = vrot.lane.b32.xlu0 %v648_v26, %s1027_s6 }
 0x167   :  { %v822_v30 = vpop.permute.xlu0 %821 }
 0x168   :  { %v824_v32 = vmul.f32 %v1023_v27, %v822_v30 }
 0x16a   :  { %v830_v33 = vadd.f32 %v829_v31, %v824_v32 }
 0x16c   :  { %832 = vrot.lane.b32.xlu1 %v830_v33, %s1027_s6 }
 0x1c1   :  { %v288_v34 = vpop.permute.xlu0 %287 }
 0x1c2   :  { %290 = vst.msk [vmem:[%s1280_s7] sm:$0xff] %vm38_vm1, %v288_v34 }
 0x1ca   :  { %v469_v35 = vpop.permute.xlu1 %468 }
 0x1cb   :  { %849 = vst.msk [vmem:[%s1280_s7 + $0x8] sm:$0xff] %vm38_vm1, %v469_v35 }
 0x1d4   :  { %v651_v36 = vpop.permute.xlu0 %650 }
 0x1d5   :  { %854 = vst.msk [vmem:[%s1280_s7 + $0x10] sm:$0xff] %vm38_vm1, %v651_v36 }
 0x1de   :  { %v833_v37 = vpop.permute.xlu1 %832 }
 0x1df   :  { %859 = vst.msk [vmem:[%s1280_s7 + $0x18] sm:$0xff] %vm38_vm1, %v833_v37 }

// kernel: mblosa_forward.4
= control target key start
LH: loop header
LB: loop body
LE: loop exit
PB: predicated region body
PF: predicated region fallthrough
CT: control target
= control target key end

     0   :  { %v998_v0 = vmov 0.0   ;;  %vm33_vm0 = vcmask 261120   ;;  %vm999_vm1 = vmmov 0   ;;  %s1000_s10 = smov 96   ;;  %s1203_s1 = inlined_call_operand.vmem [shape: f32[32,64], index: 1, kind: input, shape index: {}]   ;;  %s1204_s0 = inlined_call_operand.vmem [shape: f32[3,8,32], index: 0, kind: input, shape index: {}]   ;;  %s1205_s4 = inlined_call_operand.vmem [shape: f32[32,32], index: 4, kind: input, shape index: {}]   ;;  %s1206_s3 = inlined_call_operand.vmem [shape: f32[32,32], index: 3, kind: input, shape index: {}]   ;;  %s1207_s2 = inlined_call_operand.vmem [shape: f32[1,32], index: 2, kind: input, shape index: {}]   ;;  %s1208_s5 = inlined_call_operand.vmem [shape: f32[1,32], index: 5, kind: input, shape index: {}]   ;;  %s1209_s6 = inlined_call_operand.vmem [shape: f32[3,8,32], index: 6, kind: output, shape index: {}]  }
   0x1   :  { %868 = vmatprep.subr.mxu0 %v998_v0  ;;  %879 = vmatprep.subr.mxu1 %v998_v0  ;;  %v32_v1 = vld [vmem:[%s1203_s1 + $0x18] sm:$0xff]  ;;  %v31_v2 = vld [vmem:[%s1203_s1 + $0x10] sm:$0xff]  ;;  %v30_v3 = vld [vmem:[%s1203_s1 + $0x8] sm:$0xff] }
   0x2   :  { %869 = vmatpush3.msra.mxu0 %v32_v1  ;;  %880 = vmatpush3.msra.mxu1 %v32_v1  ;;  %v29_v4 = vld [vmem:[%s1203_s1] sm:$0xff]  ;;  %v1064_v6 = vld [vmem:[%s1204_s0 + $0x8] sm:$0xff]  ;;  %v1085_v7 = vld [vmem:[%s1204_s0 + $0x10] sm:$0xff] }
   0x3   :  { %870 = vmatprep.subr.mxu0 %v998_v0  ;;  %881 = vmatprep.subr.mxu1 %v998_v0  ;;  %v1059_v5 = vld [vmem:[%s1204_s0] sm:$0xff]  ;;  %v292_v14 = vld [vmem:[%s1205_s4 + $0x18] sm:$0xff]  ;;  %v291_v15 = vld [vmem:[%s1205_s4 + $0x10] sm:$0xff] }
   0x4   :  { %871 = vmatpush3.msra.mxu0 %v31_v2  ;;  %882 = vmatpush3.msra.mxu1 %v31_v2  ;;  %v1102_v16 = vld [vmem:[%s1206_s3 + $0x18] sm:$0xff]  ;;  %v1108_v17 = vld [vmem:[%s1206_s3 + $0x10] sm:$0xff]  ;;  %v290_v18 = vld [vmem:[%s1205_s4 + $0x8] sm:$0xff] }
   0x5   :  { %872 = vmatprep.subr.mxu0 %v998_v0  ;;  %883 = vmatprep.subr.mxu1 %v998_v0  ;;  %v1118_v19 = vld [vmem:[%s1206_s3 + $0x8] sm:$0xff]  ;;  %v289_v20 = vld [vmem:[%s1205_s4] sm:$0xff] }
   0x6   :  { %873 = vmatpush3.msra.mxu0 %v30_v3  ;;  %884 = vmatpush3.msra.mxu1 %v30_v3  ;;  %v1129_v21 = vld [vmem:[%s1206_s3] sm:$0xff] }
   0x7   :  { %874 = vmatprep.subr.mxu0 %v998_v0  ;;  %885 = vmatprep.subr.mxu1 %v998_v0  ;;  %v812_v22 = vld [vmem:[%s1207_s2] ss:$0 sm:$0xff] }
   0x8   :  { %875 = vmatpush3.msra.mxu0 %v29_v4  ;;  %876 = vmatprep.mubr.msk.f32.mxu0 %vm999_vm1, %v998_v0  ;;  %v815_v59 = vld [vmem:[%s1208_s5] ss:$0 sm:$0xff] }
   0x9   :  { %886 = vmatpush3.msra.mxu1 %v29_v4  ;;  %887 = vmatprep.mubr.msk.f32.mxu1 %vm999_vm1, %v998_v0 }
   0xa   :  { %877 = vmatmul.mubr.msk.f32.vlgmr.msra.gmra.mxu0 %vm33_vm0, %v1059_v5  ;;  %888 = vmatmul.mubr.msk.f32.vlgmr.msra.gmra.mxu1 %vm33_vm0, %v1064_v6 }
   0xb   :  { %890 = vmatprep.subr.mxu0 %v998_v0  ;;  %898 = vmatprep.mubr.msk.f32.mxu0 %vm999_vm1, %v998_v0 }
   0xc   :  { %891 = vmatpush3.msra.mxu0 %v32_v1  ;;  %901 = vmatprep.subr.mxu1 %v998_v0 }
   0xd   :  { %892 = vmatprep.subr.mxu0 %v998_v0  ;;  %909 = vmatprep.mubr.msk.f32.mxu1 %vm999_vm1, %v998_v0 }
   0xe   :  { %893 = vmatpush3.msra.mxu0 %v31_v2  ;;  %902 = vmatpush3.msra.mxu1 %v292_v14 }
   0xf   :  { %894 = vmatprep.subr.mxu0 %v998_v0  ;;  %903 = vmatprep.subr.mxu1 %v998_v0 }
  0x10   :  { %895 = vmatpush3.msra.mxu0 %v30_v3  ;;  %904 = vmatpush3.msra.mxu1 %v291_v15 }
  0x11   :  { %896 = vmatprep.subr.mxu0 %v998_v0  ;;  %905 = vmatprep.subr.mxu1 %v998_v0 }
  0x12   :  { %897 = vmatpush3.msra.mxu0 %v29_v4  ;;  %906 = vmatpush3.msra.mxu1 %v290_v18 }
  0x13   :  { %899 = vmatmul.mubr.msk.f32.vlgmr.msra.gmra.mxu0 %vm33_vm0, %v1085_v7  ;;  %912 = vmatprep.subr.mxu0 %v998_v0 }
  0x14   :  { %920 = vmatprep.mubr.msk.f32.mxu0 %vm999_vm1, %v998_v0  ;;  %913 = vmatpush3.msra.mxu0 %v1102_v16 }
  0x15   :  { %914 = vmatprep.subr.mxu0 %v998_v0  ;;  %907 = vmatprep.subr.mxu1 %v998_v0 }
  0x16   :  { %915 = vmatpush3.msra.mxu0 %v1108_v17  ;;  %908 = vmatpush3.msra.mxu1 %v289_v20 }
  0x17   :  { %916 = vmatprep.subr.mxu0 %v998_v0  ;;  %923 = vmatprep.subr.mxu1 %v998_v0 }
  0x18   :  { %917 = vmatpush3.msra.mxu0 %v1118_v19  ;;  %910 = vmatmul.mubr.msk.f32.vlgmr.msra.gmra.mxu1 %vm33_vm0, %v1059_v5 }
  0x19   :  { %918 = vmatprep.subr.mxu0 %v998_v0  ;;  %924 = vmatpush3.msra.mxu1 %v292_v14 }
  0x1a   :  { %919 = vmatpush3.msra.mxu0 %v1129_v21  ;;  %925 = vmatprep.subr.mxu1 %v998_v0 }
  0x1b   :  { %934 = vmatprep.subr.mxu0 %v998_v0  ;;  %931 = vmatprep.mubr.msk.f32.mxu1 %vm999_vm1, %v998_v0 }
  0x1c   :  { %926 = vmatpush3.msra.mxu1 %v291_v15 }
  0x1d   :  { %927 = vmatprep.subr.mxu1 %v998_v0 }
  0x1e   :  { %928 = vmatpush3.msra.mxu1 %v290_v18 }
  0x1f   :  { %929 = vmatprep.subr.mxu1 %v998_v0 }
  0x20   :  { %930 = vmatpush3.msra.mxu1 %v289_v20 }
  0x21   :  { %945 = vmatprep.subr.mxu1 %v998_v0  ;;  %932 = vmatmul.mubr.msk.f32.vlgmr.msra.gmra.mxu1 %vm33_vm0, %v1064_v6 }
  0x22   :  { %946 = vmatpush3.msra.mxu1 %v292_v14  ;;  %953 = vmatprep.mubr.msk.f32.mxu1 %vm999_vm1, %v998_v0 }
  0x23   :  { %947 = vmatprep.subr.mxu1 %v998_v0 }
  0x24   :  { %948 = vmatpush3.msra.mxu1 %v291_v15 }
  0x25   :  { %949 = vmatprep.subr.mxu1 %v998_v0 }
  0x26   :  { %950 = vmatpush3.msra.mxu1 %v290_v18 }
  0x27   :  { %951 = vmatprep.subr.mxu1 %v998_v0 }
  0x28   :  { %952 = vmatpush3.msra.mxu1 %v289_v20 }
  0x29   :  { %954 = vmatmul.mubr.msk.f32.vlgmr.msra.gmra.mxu1 %vm33_vm0, %v1085_v7 }
  0xca   :  { %v103_v8 = vpop.f32.mrf.mxu0  ;;  %v176_v9 = vpop.f32.mrf.mxu1 }
  0xcb   :  { %262 = vrot.lane.b32.xlu0 %v176_v9, %s1000_s10  ;;  %v259_v23 = vadd.f32 %v812_v22, %v103_v8  ;;  %v260_v27 = vadd.f32 %v812_v22, %v176_v9 }
  0xcc   :  { %v878_v10 = vpop.f32.mrf.mxu0  ;;  %v889_v11 = vpop.f32.mrf.mxu1 }
  0xd3   :  { %v249_v12 = vpop.f32.mrf.mxu0 }
  0xd4   :  { %272 = vrot.lane.b32.xlu0 %v249_v12, %s1000_s10 }
  0xd5   :  { %v900_v13 = vpop.f32.mrf.mxu0 }
  0xd8   :  { %v359_v52 = vpop.f32.mrf.mxu1 }
  0xda   :  { %v911_v53 = vpop.f32.mrf.mxu1 }
  0xe1   :  { %v537_v54 = vpop.f32.mrf.mxu1 }
  0xe3   :  { %v933_v55 = vpop.f32.mrf.mxu1 }
  0xe9   :  { %v707_v56 = vpop.f32.mrf.mxu1 }
  0xeb   :  { %v955_v57 = vpop.f32.mrf.mxu1 }
 0x13d   :  { %v263_v24 = vpop.permute.xlu0 %262 }
 0x13e   :  { %v265_v25 = vadd.f32 %v263_v24, %v259_v23 }
 0x140   :  { %v266_v26 = vmul.f32 0.2, %v265_v25 }
 0x142   :  { %970 = vtanh.f32 %v266_v26 }
 0x146   :  { %v273_v28 = vpop.permute.xlu0 %272 }
 0x147   :  { %v275_v29 = vadd.f32 %v273_v28, %v259_v23  ;;  %v454_v30 = vadd.f32 %v273_v28, %v260_v27 }
 0x149   :  { %v276_v31 = vmul.f32 0.2, %v275_v29  ;;  %v455_v32 = vmul.f32 0.2, %v454_v30 }
 0x14b   :  { %972 = vtanh.f32 %v276_v31 }
 0x14c   :  { %974 = vtanh.f32 %v455_v32 }
 0x14f   :  { %v971_v33 = vpop.eup %970 }
 0x150   :  { %v268_v34 = vmul.f32 5.0, %v971_v33 }
 0x152   :  { %v269_v36 = vmul.f32 1.442695, %v268_v34 }
 0x154   :  { %976 = vpow2.f32 %v269_v36 }
 0x158   :  { %v973_v35 = vpop.eup %972 }
 0x159   :  { %v975_v37 = vpop.eup %974  ;;  %v278_v38 = vmul.f32 5.0, %v973_v35 }
 0x15a   :  { %v457_v40 = vmul.f32 5.0, %v975_v37 }
 0x15b   :  { %v279_v39 = vmul.f32 1.442695, %v278_v38 }
 0x15c   :  { %v458_v41 = vmul.f32 1.442695, %v457_v40 }
 0x15d   :  { %978 = vpow2.f32 %v279_v39 }
 0x15e   :  { %980 = vpow2.f32 %v458_v41 }
 0x161   :  { %v977_v42 = vpop.eup %976 }
 0x16a   :  { %v979_v43 = vpop.eup %978 }
 0x16b   :  { %v281_v44 = vadd.f32 %v979_v43, %v977_v42  ;;  %v981_v45 = vpop.eup %980 }
 0x16c   :  { %v460_v50 = vmul.f32 %v981_v45, %v1064_v6 }
 0x16d   :  { %982 = vrcp.f32 %v281_v44  ;;  %v282_v46 = vmul.f32 %v281_v44, %v1059_v5 }
 0x16e   :  { %984 = vrcp.f32 %v981_v45 }
 0x17a   :  { %v983_v47 = vpop.eup %982 }
 0x17b   :  { %v1158_v48 = vmul.f32 %v983_v47, %v282_v46  ;;  %v985_v49 = vpop.eup %984 }
 0x17c   :  { %v462_v51 = vmul.f32 %v985_v49, %v460_v50 }
 0x17d   :  { %921 = vmatmul.mubr.msk.f32.vlgmr.msra.gmra.mxu0 %vm33_vm0, %v1158_v48 }
 0x17e   :  { %935 = vmatpush3.msra.mxu0 %v1102_v16  ;;  %942 = vmatprep.mubr.msk.f32.mxu0 %vm999_vm1, %v998_v0 }
 0x17f   :  { %936 = vmatprep.subr.mxu0 %v998_v0 }
 0x180   :  { %937 = vmatpush3.msra.mxu0 %v1108_v17 }
 0x181   :  { %938 = vmatprep.subr.mxu0 %v998_v0 }
 0x182   :  { %939 = vmatpush3.msra.mxu0 %v1118_v19 }
 0x183   :  { %940 = vmatprep.subr.mxu0 %v998_v0 }
 0x184   :  { %941 = vmatpush3.msra.mxu0 %v1129_v21 }
 0x185   :  { %943 = vmatmul.mubr.msk.f32.vlgmr.msra.gmra.mxu0 %vm33_vm0, %v462_v51  ;;  %956 = vmatprep.subr.mxu0 %v998_v0 }
 0x186   :  { %957 = vmatpush3.msra.mxu0 %v1102_v16  ;;  %964 = vmatprep.mubr.msk.f32.mxu0 %vm999_vm1, %v998_v0 }
 0x187   :  { %958 = vmatprep.subr.mxu0 %v998_v0 }
 0x188   :  { %959 = vmatpush3.msra.mxu0 %v1108_v17 }
 0x189   :  { %960 = vmatprep.subr.mxu0 %v998_v0 }
 0x18a   :  { %961 = vmatpush3.msra.mxu0 %v1118_v19 }
 0x18b   :  { %962 = vmatprep.subr.mxu0 %v998_v0 }
 0x18c   :  { %963 = vmatpush3.msra.mxu0 %v1129_v21 }
 0x18d   :  { %965 = vmatmul.mubr.f32.vlgmr.msra.gmra.mxu0 %v998_v0 }
 0x23d   :  { %v432_v58 = vpop.f32.mrf.mxu0 }
 0x23e   :  { %v433_v60 = vadd.f32 %v432_v58, %v359_v52 }
 0x23f   :  { %v922_v61 = vpop.f32.mrf.mxu0 }
 0x240   :  { %v443_v62 = vadd.f32 %v815_v59, %v433_v60 }
 0x242   :  { %v444_v63 = vsub.f32 0.0, %v443_v62 }
 0x244   :  { %v445_v1 = vmul.f32 1.442695, %v444_v63 }
 0x245   :  { %v610_v2 = vpop.f32.mrf.mxu0 }
 0x246   :  { %986 = vpow2.f32 %v445_v1  ;;  %v611_v3 = vadd.f32 %v610_v2, %v537_v54 }
 0x247   :  { %v944_v0 = vpop.f32.mrf.mxu0 }
 0x248   :  { %v621_v4 = vadd.f32 %v815_v59, %v611_v3 }
 0x24a   :  { %v622_v8 = vsub.f32 0.0, %v621_v4 }
 0x24c   :  { %v623_v9 = vmul.f32 1.442695, %v622_v8 }
 0x24d   :  { %v780_v10 = vpop.f32.mrf.mxu0 }
 0x24e   :  { %988 = vpow2.f32 %v623_v9  ;;  %v781_v11 = vadd.f32 %v780_v10, %v707_v56 }
 0x24f   :  { %v966_v12 = vpop.f32.mrf.mxu0 }
 0x250   :  { %v791_v13 = vadd.f32 %v815_v59, %v781_v11 }
 0x252   :  { %v792_v14 = vsub.f32 0.0, %v791_v13 }
 0x253   :  { %v987_v15 = vpop.eup %986 }
 0x254   :  { %v447_v16 = vadd.f32 1.0, %v987_v15  ;;  %v793_v17 = vmul.f32 1.442695, %v792_v14 }
 0x256   :  { %990 = vrcp.f32 %v447_v16 }
 0x257   :  { %992 = vpow2.f32 %v793_v17 }
 0x25b   :  { %v989_v18 = vpop.eup %988 }
 0x25c   :  { %v625_v19 = vadd.f32 1.0, %v989_v18 }
 0x25e   :  { %994 = vrcp.f32 %v625_v19 }
 0x263   :  { %v991_v20 = vpop.eup %990 }
 0x264   :  { %v993_v21 = vpop.eup %992  ;;  %v450_v22 = vsub.f32 1.0, %v991_v20  ;;  %v449_v24 = vmul.f32 %v991_v20, %v1158_v48 }
 0x265   :  { %v795_v23 = vadd.f32 1.0, %v993_v21 }
 0x266   :  { %v451_v25 = vmul.f32 %v450_v22, %v1059_v5 }
 0x267   :  { %996 = vrcp.f32 %v795_v23 }
 0x268   :  { %v452_v26 = vadd.f32 %v451_v25, %v449_v24 }
 0x26a   :  { %453 = vst.msk [vmem:[%s1209_s6] sm:$0xff] %vm33_vm0, %v452_v26 }
 0x26b   :  { %v995_v27 = vpop.eup %994 }
 0x26c   :  { %v628_v28 = vsub.f32 1.0, %v995_v27  ;;  %v627_v29 = vmul.f32 %v995_v27, %v462_v51 }
 0x26e   :  { %v629_v30 = vmul.f32 %v1064_v6, %v628_v28 }
 0x270   :  { %v630_v31 = vadd.f32 %v629_v30, %v627_v29 }
 0x272   :  { %819 = vst.msk [vmem:[%s1209_s6 + $0x8] sm:$0xff] %vm33_vm0, %v630_v31 }
 0x274   :  { %v997_v32 = vpop.eup %996 }
 0x275   :  { %v798_v5 = vsub.f32 1.0, %v997_v32  ;;  %v797_v33 = vmul.f32 0.0, %v997_v32 }
 0x277   :  { %v799_v34 = vmul.f32 %v1085_v7, %v798_v5 }
 0x279   :  { %v800_v35 = vadd.f32 %v799_v34, %v797_v33 }
 0x27b   :  { %822 = vst.msk [vmem:[%s1209_s6 + $0x10] sm:$0xff] %vm33_vm0, %v800_v35 }

// kernel: mblosa_forward.3
= control target key start
LH: loop header
LB: loop body
LE: loop exit
PB: predicated region body
PF: predicated region fallthrough
CT: control target
= control target key end

     0   :  { %v1310_v0 = vmov 0.0   ;;  %vm40_vm0 = vcmask 261120   ;;  %vm1311_vm1 = vmmov 0   ;;  %s1583_s1 = inlined_call_operand.vmem [shape: f32[32,64], index: 1, kind: input, shape index: {}]   ;;  %s1584_s0 = inlined_call_operand.vmem [shape: f32[4,8,32], index: 0, kind: input, shape index: {}]   ;;  %s1585_s3 = inlined_call_operand.vmem [shape: f32[32,32], index: 3, kind: input, shape index: {}]   ;;  %s1586_s7 = inlined_call_operand.vmem [shape: f32[4,8,32], index: 7, kind: output, shape index: {0}]   ;;  %s1587_s5 = inlined_call_operand.vmem [shape: f32[32,32], index: 5, kind: input, shape index: {}]   ;;  %s1588_s2 = inlined_call_operand.vmem [shape: f32[1,32], index: 2, kind: input, shape index: {}]   ;;  %s1589_s4 = inlined_call_operand.vmem [shape: f32[1,32], index: 4, kind: input, shape index: {}]   ;;  %s1590_s6 = inlined_call_operand.vmem [shape: f32[1,32], index: 6, kind: input, shape index: {}]   ;;  %s1591_s8 = inlined_call_operand.vmem [shape: f32[8,32], index: 8, kind: output, shape index: {1}]  }
   0x1   :  { %1135 = vmatprep.subr.mxu0 %v1310_v0  ;;  %1146 = vmatprep.subr.mxu1 %v1310_v0  ;;  %v39_v1 = vld [vmem:[%s1583_s1 + $0x18] sm:$0xff]  ;;  %v38_v2 = vld [vmem:[%s1583_s1 + $0x10] sm:$0xff]  ;;  %v37_v3 = vld [vmem:[%s1583_s1 + $0x8] sm:$0xff]  ;;  %1065 = vst.msk [vmem:[%s1586_s7 + $0x18] sm:$0xff] %vm40_vm0, %v1310_v0 }
   0x2   :  { %1136 = vmatpush3.msra.mxu0 %v39_v1  ;;  %1147 = vmatpush3.msra.mxu1 %v39_v1  ;;  %v36_v4 = vld [vmem:[%s1583_s1] sm:$0xff]  ;;  %v1386_v6 = vld [vmem:[%s1584_s0 + $0x8] sm:$0xff]  ;;  %v1407_v7 = vld [vmem:[%s1584_s0 + $0x10] sm:$0xff] }
   0x3   :  { %1137 = vmatprep.subr.mxu0 %v1310_v0  ;;  %1148 = vmatprep.subr.mxu1 %v1310_v0  ;;  %v1381_v5 = vld [vmem:[%s1584_s0] sm:$0xff]  ;;  %v1057_v8 = vld [vmem:[%s1584_s0 + $0x18] sm:$0xff]  ;;  %s1312_s0 = smov 96   ;;  %v1433_v18 = vld [vmem:[%s1585_s3 + $0x10] sm:$0xff] }
   0x4   :  { %1138 = vmatpush3.msra.mxu0 %v38_v2  ;;  %1149 = vmatpush3.msra.mxu1 %v38_v2  ;;  %v1428_v17 = vld [vmem:[%s1585_s3 + $0x18] sm:$0xff]  ;;  %v1445_v19 = vld [vmem:[%s1585_s3 + $0x8] sm:$0xff]  ;;  %v1452_v20 = vld [vmem:[%s1585_s3] sm:$0xff] }
   0x5   :  { %1139 = vmatprep.subr.mxu0 %v1310_v0  ;;  %1150 = vmatprep.subr.mxu1 %v1310_v0  ;;  %v1461_v21 = vld [vmem:[%s1587_s5 + $0x18] sm:$0xff]  ;;  %v1466_v22 = vld [vmem:[%s1587_s5 + $0x10] sm:$0xff]  ;;  %v1062_v23 = vld [vmem:[%s1588_s2] ss:$0 sm:$0xff] }
   0x6   :  { %1140 = vmatpush3.msra.mxu0 %v37_v3  ;;  %1151 = vmatpush3.msra.mxu1 %v37_v3 }
   0x7   :  { %1141 = vmatprep.subr.mxu0 %v1310_v0  ;;  %1152 = vmatprep.subr.mxu1 %v1310_v0 }
   0x8   :  { %1142 = vmatpush3.msra.mxu0 %v36_v4  ;;  %1143 = vmatprep.mubr.msk.f32.mxu0 %vm1311_vm1, %v1310_v0 }
   0x9   :  { %1153 = vmatpush3.msra.mxu1 %v36_v4  ;;  %1154 = vmatprep.mubr.msk.f32.mxu1 %vm1311_vm1, %v1310_v0 }
   0xa   :  { %1144 = vmatmul.mubr.msk.f32.vlgmr.msra.gmra.mxu0 %vm40_vm0, %v1381_v5  ;;  %1155 = vmatmul.mubr.msk.f32.vlgmr.msra.gmra.mxu1 %vm40_vm0, %v1386_v6 }
   0xb   :  { %1157 = vmatprep.subr.mxu0 %v1310_v0  ;;  %1168 = vmatprep.subr.mxu1 %v1310_v0 }
   0xc   :  { %1158 = vmatpush3.msra.mxu0 %v39_v1  ;;  %1169 = vmatpush3.msra.mxu1 %v39_v1 }
   0xd   :  { %1159 = vmatprep.subr.mxu0 %v1310_v0  ;;  %1170 = vmatprep.subr.mxu1 %v1310_v0 }
   0xe   :  { %1160 = vmatpush3.msra.mxu0 %v38_v2  ;;  %1171 = vmatpush3.msra.mxu1 %v38_v2 }
   0xf   :  { %1161 = vmatprep.subr.mxu0 %v1310_v0  ;;  %1172 = vmatprep.subr.mxu1 %v1310_v0 }
  0x10   :  { %1162 = vmatpush3.msra.mxu0 %v37_v3  ;;  %1173 = vmatpush3.msra.mxu1 %v37_v3 }
  0x11   :  { %1163 = vmatprep.subr.mxu0 %v1310_v0  ;;  %1174 = vmatprep.subr.mxu1 %v1310_v0 }
  0x12   :  { %1164 = vmatpush3.msra.mxu0 %v36_v4  ;;  %1165 = vmatprep.mubr.msk.f32.mxu0 %vm1311_vm1, %v1310_v0 }
  0x13   :  { %1175 = vmatpush3.msra.mxu1 %v36_v4  ;;  %1176 = vmatprep.mubr.msk.f32.mxu1 %vm1311_vm1, %v1310_v0 }
  0x14   :  { %1166 = vmatmul.mubr.msk.f32.vlgmr.msra.gmra.mxu0 %vm40_vm0, %v1407_v7  ;;  %1177 = vmatmul.mubr.msk.f32.vlgmr.msra.gmra.mxu1 %vm40_vm0, %v1057_v8 }
  0x15   :  { %1179 = vmatprep.subr.mxu0 %v1310_v0  ;;  %1187 = vmatprep.mubr.msk.f32.mxu0 %vm1311_vm1, %v1310_v0 }
  0x16   :  { %1190 = vmatprep.subr.mxu1 %v1310_v0  ;;  %1198 = vmatprep.mubr.msk.f32.mxu1 %vm1311_vm1, %v1310_v0 }
  0x17   :  { %1180 = vmatpush3.msra.mxu0 %v1428_v17  ;;  %1191 = vmatpush3.msra.mxu1 %v1461_v21 }
  0x18   :  { %1181 = vmatprep.subr.mxu0 %v1310_v0  ;;  %1192 = vmatprep.subr.mxu1 %v1310_v0 }
  0x19   :  { %1182 = vmatpush3.msra.mxu0 %v1433_v18  ;;  %1193 = vmatpush3.msra.mxu1 %v1466_v22 }
  0x1a   :  { %1183 = vmatprep.subr.mxu0 %v1310_v0  ;;  %1194 = vmatprep.subr.mxu1 %v1310_v0 }
  0x1b   :  { %1184 = vmatpush3.msra.mxu0 %v1445_v19 }
  0x1c   :  { %1185 = vmatprep.subr.mxu0 %v1310_v0 }
  0x1d   :  { %1186 = vmatpush3.msra.mxu0 %v1452_v20 }
  0x1e   :  { %1201 = vmatprep.subr.mxu0 %v1310_v0 }
  0xca   :  { %v110_v9 = vpop.f32.mrf.mxu0  ;;  %v183_v10 = vpop.f32.mrf.mxu1 }
  0xcb   :  { %343 = vrot.lane.b32.xlu0 %v183_v10, %s1312_s0  ;;  %v339_v24 = vadd.f32 %v1062_v23, %v110_v9  ;;  %v340_v28 = vadd.f32 %v1062_v23, %v183_v10 }
  0xcc   :  { %v1145_v11 = vpop.f32.mrf.mxu0  ;;  %v1156_v12 = vpop.f32.mrf.mxu1 }
  0xd4   :  { %v256_v13 = vpop.f32.mrf.mxu0  ;;  %v329_v14 = vpop.f32.mrf.mxu1 }
  0xd5   :  { %364 = vrot.lane.b32.xlu1 %v329_v14, %s1312_s0  ;;  %353 = vrot.lane.b32.xlu0 %v256_v13, %s1312_s0  ;;  %v341_v29 = vadd.f32 %v1062_v23, %v256_v13 }
  0xd6   :  { %v1167_v15 = vpop.f32.mrf.mxu0  ;;  %v1178_v16 = vpop.f32.mrf.mxu1 }
 0x13d   :  { %v344_v25 = vpop.permute.xlu0 %343 }
 0x13e   :  { %v346_v26 = vadd.f32 %v344_v25, %v339_v24 }
 0x140   :  { %v347_v27 = vmul.f32 0.2, %v346_v26 }
 0x142   :  { %1270 = vtanh.f32 %v347_v27 }
 0x147   :  { %v365_v30 = vpop.permute.xlu1 %364  ;;  %v354_v31 = vpop.permute.xlu0 %353 }
 0x148   :  { %v367_v32 = vadd.f32 %v365_v30, %v339_v24  ;;  %v384_v33 = vadd.f32 %v365_v30, %v340_v28  ;;  %v396_v34 = vadd.f32 %v365_v30, %v341_v29  ;;  %v356_v35 = vadd.f32 %v354_v31, %v339_v24 }
 0x149   :  { %v378_v36 = vadd.f32 %v354_v31, %v340_v28 }
 0x14a   :  { %v368_v37 = vmul.f32 0.2, %v367_v32  ;;  %v385_v38 = vmul.f32 0.2, %v384_v33  ;;  %v397_v39 = vmul.f32 0.2, %v396_v34 }
 0x14b   :  { %v357_v40 = vmul.f32 0.2, %v356_v35  ;;  %v379_v41 = vmul.f32 0.2, %v378_v36 }
 0x14c   :  { %1272 = vtanh.f32 %v368_v37 }
 0x14d   :  { %1274 = vtanh.f32 %v385_v38 }
 0x14e   :  { %1276 = vtanh.f32 %v397_v39 }
 0x14f   :  { %1278 = vtanh.f32 %v357_v40  ;;  %v1271_v42 = vpop.eup %1270 }
 0x150   :  { %1280 = vtanh.f32 %v379_v41  ;;  %v349_v43 = vmul.f32 5.0, %v1271_v42 }
 0x152   :  { %v350_v46 = vmul.f32 1.442695, %v349_v43 }
 0x154   :  { %1282 = vpow2.f32 %v350_v46 }
 0x159   :  { %v1273_v44 = vpop.eup %1272 }
 0x15a   :  { %v1275_v45 = vpop.eup %1274  ;;  %v370_v48 = vmul.f32 5.0, %v1273_v44 }
 0x15b   :  { %v1277_v47 = vpop.eup %1276  ;;  %v387_v49 = vmul.f32 5.0, %v1275_v45 }
 0x15c   :  { %v1279_v50 = vpop.eup %1278  ;;  %v399_v51 = vmul.f32 5.0, %v1277_v47  ;;  %v371_v57 = vmul.f32 1.442695, %v370_v48 }
 0x15d   :  { %v1281_v52 = vpop.eup %1280  ;;  %v388_v53 = vmul.f32 1.442695, %v387_v49  ;;  %v359_v54 = vmul.f32 5.0, %v1279_v50 }
 0x15e   :  { %v400_v55 = vmul.f32 1.442695, %v399_v51  ;;  %v381_v56 = vmul.f32 5.0, %v1281_v52 }
 0x15f   :  { %1284 = vpow2.f32 %v388_v53  ;;  %v360_v58 = vmul.f32 1.442695, %v359_v54 }
 0x160   :  { %1286 = vpow2.f32 %v400_v55  ;;  %v382_v59 = vmul.f32 1.442695, %v381_v56 }
 0x161   :  { %1288 = vpow2.f32 %v360_v58  ;;  %v1283_v60 = vpop.eup %1282 }
 0x162   :  { %1290 = vpow2.f32 %v382_v59 }
 0x163   :  { %1292 = vpow2.f32 %v371_v57 }
 0x16c   :  { %v1285_v61 = vpop.eup %1284 }
 0x16d   :  { %v1287_v62 = vpop.eup %1286 }
 0x16e   :  { %v1289_v63 = vpop.eup %1288  ;;  %1294 = vrcp.f32 %v1287_v62  ;;  %v402_v9 = vmul.f32 %v1287_v62, %v1407_v7  ;;  %v1066_v7 = vld [vmem:[%s1589_s4] ss:$0 sm:$0xff] }
 0x16f   :  { %v1291_v1 = vpop.eup %1290  ;;  %v362_v2 = vadd.f32 %v1289_v63, %v1283_v60 }
 0x170   :  { %v1293_v3 = vpop.eup %1292  ;;  %v390_v4 = vadd.f32 %v1291_v1, %v1285_v61 }
 0x171   :  { %v373_v8 = vadd.f32 %v1293_v3, %v362_v2 }
 0x172   :  { %1296 = vrcp.f32 %v390_v4  ;;  %v391_v12 = vmul.f32 %v1386_v6, %v390_v4  ;;  %v494_v6 = vld [vmem:[%s1587_s5] sm:$0xff] }
 0x173   :  { %1298 = vrcp.f32 %v373_v8  ;;  %v374_v14 = vmul.f32 %v373_v8, %v1381_v5  ;;  %v495_v5 = vld [vmem:[%s1587_s5 + $0x8] sm:$0xff] }
 0x174   :  { %1195 = vmatpush3.msra.mxu1 %v495_v5 }
 0x175   :  { %1196 = vmatprep.subr.mxu1 %v1310_v0 }
 0x176   :  { %1197 = vmatpush3.msra.mxu1 %v494_v6 }
 0x177   :  { %1212 = vmatprep.subr.mxu1 %v1310_v0 }
 0x17b   :  { %v1295_v10 = vpop.eup %1294 }
 0x17c   :  { %v1476_v11 = vmul.f32 %v1295_v10, %v402_v9 }
 0x17e   :  { %1064 = vst.msk [vmem:[%s1586_s7 + $0x10] sm:$0xff] %vm40_vm0, %v1476_v11 }
 0x17f   :  { %v1297_v13 = vpop.eup %1296 }
 0x180   :  { %v1299_v15 = vpop.eup %1298  ;;  %v1485_v16 = vmul.f32 %v1297_v13, %v391_v12 }
 0x181   :  { %v1487_v23 = vmul.f32 %v1299_v15, %v374_v14 }
 0x182   :  { %1063 = vst.msk [vmem:[%s1586_s7 + $0x8] sm:$0xff] %vm40_vm0, %v1485_v16 }
 0x183   :  { %377 = vst.msk [vmem:[%s1586_s7] sm:$0xff] %vm40_vm0, %v1487_v23  ;;  %1188 = vmatmul.mubr.msk.f32.vlgmr.msra.gmra.mxu0 %vm40_vm0, %v1487_v23 }
 0x184   :  { %1202 = vmatpush3.msra.mxu0 %v1428_v17  ;;  %1209 = vmatprep.mubr.msk.f32.mxu0 %vm1311_vm1, %v1310_v0 }
 0x185   :  { %1203 = vmatprep.subr.mxu0 %v1310_v0 }
 0x186   :  { %1204 = vmatpush3.msra.mxu0 %v1433_v18 }
 0x187   :  { %1205 = vmatprep.subr.mxu0 %v1310_v0 }
 0x188   :  { %1206 = vmatpush3.msra.mxu0 %v1445_v19 }
 0x189   :  { %1207 = vmatprep.subr.mxu0 %v1310_v0 }
 0x18a   :  { %1208 = vmatpush3.msra.mxu0 %v1452_v20 }
 0x18b   :  { %1210 = vmatmul.mubr.msk.f32.vlgmr.msra.gmra.mxu0 %vm40_vm0, %v1485_v16  ;;  %1223 = vmatprep.subr.mxu0 %v1310_v0 }
 0x18c   :  { %1224 = vmatpush3.msra.mxu0 %v1428_v17  ;;  %1231 = vmatprep.mubr.msk.f32.mxu0 %vm1311_vm1, %v1310_v0 }
 0x18d   :  { %1225 = vmatprep.subr.mxu0 %v1310_v0 }
 0x18e   :  { %1226 = vmatpush3.msra.mxu0 %v1433_v18 }
 0x18f   :  { %1227 = vmatprep.subr.mxu0 %v1310_v0 }
 0x190   :  { %1228 = vmatpush3.msra.mxu0 %v1445_v19 }
 0x191   :  { %1229 = vmatprep.subr.mxu0 %v1310_v0 }
 0x192   :  { %1230 = vmatpush3.msra.mxu0 %v1452_v20 }
 0x193   :  { %1232 = vmatmul.mubr.msk.f32.vlgmr.msra.gmra.mxu0 %vm40_vm0, %v1476_v11  ;;  %1245 = vmatprep.subr.mxu0 %v1310_v0 }
 0x194   :  { %1246 = vmatpush3.msra.mxu0 %v1428_v17  ;;  %1253 = vmatprep.mubr.msk.f32.mxu0 %vm1311_vm1, %v1310_v0 }
 0x195   :  { %1247 = vmatprep.subr.mxu0 %v1310_v0 }
 0x196   :  { %1248 = vmatpush3.msra.mxu0 %v1433_v18 }
 0x197   :  { %1249 = vmatprep.subr.mxu0 %v1310_v0 }
 0x198   :  { %1250 = vmatpush3.msra.mxu0 %v1445_v19 }
 0x199   :  { %1251 = vmatprep.subr.mxu0 %v1310_v0 }
 0x19a   :  { %1252 = vmatpush3.msra.mxu0 %v1452_v20 }
 0x19b   :  { %1254 = vmatmul.mubr.f32.vlgmr.msra.gmra.mxu0 %v1310_v0 }
 0x243   :  { %v489_v17 = vpop.f32.mrf.mxu0 }
 0x244   :  { %v490_v18 = vadd.f32 %v1066_v7, %v489_v17 }
 0x245   :  { %v1189_v19 = vpop.f32.mrf.mxu0 }
 0x246   :  { %v493_v20 = vmax.f32 %v490_v18, 0.0 }
 0x248   :  { %1199 = vmatmul.mubr.msk.f32.vlgmr.msra.gmra.mxu1 %vm40_vm0, %v493_v20 }
 0x249   :  { %1213 = vmatpush3.msra.mxu1 %v1461_v21  ;;  %1220 = vmatprep.mubr.msk.f32.mxu1 %vm1311_vm1, %v1310_v0 }
 0x24a   :  { %1214 = vmatprep.subr.mxu1 %v1310_v0 }
 0x24b   :  { %v647_v24 = vpop.f32.mrf.mxu0  ;;  %1215 = vmatpush3.msra.mxu1 %v1466_v22 }
 0x24c   :  { %v648_v25 = vadd.f32 %v1066_v7, %v647_v24  ;;  %1216 = vmatprep.subr.mxu1 %v1310_v0 }
 0x24d   :  { %v1211_v26 = vpop.f32.mrf.mxu0  ;;  %1217 = vmatpush3.msra.mxu1 %v495_v5 }
 0x24e   :  { %v651_v27 = vmax.f32 %v648_v25, 0.0  ;;  %1218 = vmatprep.subr.mxu1 %v1310_v0 }
 0x24f   :  { %1219 = vmatpush3.msra.mxu1 %v494_v6 }
 0x250   :  { %1221 = vmatmul.mubr.msk.f32.vlgmr.msra.gmra.mxu1 %vm40_vm0, %v651_v27  ;;  %1234 = vmatprep.subr.mxu1 %v1310_v0 }
 0x251   :  { %1235 = vmatpush3.msra.mxu1 %v1461_v21  ;;  %1242 = vmatprep.mubr.msk.f32.mxu1 %vm1311_vm1, %v1310_v0 }
 0x252   :  { %1236 = vmatprep.subr.mxu1 %v1310_v0 }
 0x253   :  { %v794_v28 = vpop.f32.mrf.mxu0  ;;  %1237 = vmatpush3.msra.mxu1 %v1466_v22 }
 0x254   :  { %v795_v29 = vadd.f32 %v1066_v7, %v794_v28  ;;  %1238 = vmatprep.subr.mxu1 %v1310_v0 }
 0x255   :  { %v1233_v30 = vpop.f32.mrf.mxu0  ;;  %1239 = vmatpush3.msra.mxu1 %v495_v5 }
 0x256   :  { %v798_v31 = vmax.f32 %v795_v29, 0.0  ;;  %1240 = vmatprep.subr.mxu1 %v1310_v0 }
 0x257   :  { %1241 = vmatpush3.msra.mxu1 %v494_v6 }
 0x258   :  { %1243 = vmatmul.mubr.msk.f32.vlgmr.msra.gmra.mxu1 %vm40_vm0, %v798_v31  ;;  %1256 = vmatprep.subr.mxu1 %v1310_v0 }
 0x259   :  { %1257 = vmatpush3.msra.mxu1 %v1461_v21  ;;  %1264 = vmatprep.mubr.msk.f32.mxu1 %vm1311_vm1, %v1310_v0 }
 0x25a   :  { %1258 = vmatprep.subr.mxu1 %v1310_v0 }
 0x25b   :  { %v941_v32 = vpop.f32.mrf.mxu0  ;;  %1259 = vmatpush3.msra.mxu1 %v1466_v22  ;;  %v1068_v22 = vld [vmem:[%s1590_s6] ss:$0 sm:$0xff] }
 0x25c   :  { %v942_v33 = vadd.f32 %v1066_v7, %v941_v32  ;;  %1260 = vmatprep.subr.mxu1 %v1310_v0 }
 0x25d   :  { %v1255_v34 = vpop.f32.mrf.mxu0  ;;  %1261 = vmatpush3.msra.mxu1 %v495_v5 }
 0x25e   :  { %v945_v35 = vmax.f32 %v942_v33, 0.0  ;;  %1262 = vmatprep.subr.mxu1 %v1310_v0 }
 0x25f   :  { %1263 = vmatpush3.msra.mxu1 %v494_v6 }
 0x260   :  { %1265 = vmatmul.mubr.msk.f32.vlgmr.msra.gmra.mxu1 %vm40_vm0, %v945_v35 }
 0x308   :  { %v574_v21 = vpop.f32.mrf.mxu1 }
 0x309   :  { %v575_v42 = vadd.f32 %v1068_v22, %v574_v21 }
 0x30a   :  { %v1200_v36 = vpop.f32.mrf.mxu1 }
 0x310   :  { %v721_v37 = vpop.f32.mrf.mxu1 }
 0x311   :  { %v722_v41 = vadd.f32 %v1068_v22, %v721_v37 }
 0x312   :  { %v1222_v38 = vpop.f32.mrf.mxu1 }
 0x313   :  { %v1019_v44 = vmax.f32 %v575_v42, %v722_v41 }
 0x318   :  { %v868_v39 = vpop.f32.mrf.mxu1 }
 0x319   :  { %v869_v43 = vadd.f32 %v1068_v22, %v868_v39 }
 0x31a   :  { %v1244_v40 = vpop.f32.mrf.mxu1 }
 0x31b   :  { %v1020_v46 = vmax.f32 %v1019_v44, %v869_v43 }
 0x320   :  { %v1015_v45 = vpop.f32.mrf.mxu1 }
 0x321   :  { %v1016_v0 = vadd.f32 %v1068_v22, %v1015_v45 }
 0x322   :  { %v1266_v47 = vpop.f32.mrf.mxu1 }
 0x323   :  { %v1021_v48 = vmax.f32 %v1020_v46, %v1016_v0 }
 0x325   :  { %v1022_v49 = vsub.f32 %v575_v42, %v1021_v48  ;;  %v1026_v50 = vsub.f32 %v722_v41, %v1021_v48  ;;  %v1032_v51 = vsub.f32 %v869_v43, %v1021_v48  ;;  %v1038_v52 = vsub.f32 %v1016_v0, %v1021_v48 }
 0x327   :  { %v1023_v53 = vmul.f32 1.442695, %v1022_v49  ;;  %v1027_v54 = vmul.f32 1.442695, %v1026_v50  ;;  %v1033_v55 = vmul.f32 1.442695, %v1032_v51 }
 0x328   :  { %v1039_v56 = vmul.f32 1.442695, %v1038_v52 }
 0x329   :  { %1300 = vpow2.f32 %v1023_v53 }
 0x32a   :  { %1302 = vpow2.f32 %v1027_v54 }
 0x32b   :  { %1304 = vpow2.f32 %v1033_v55 }
 0x32c   :  { %1306 = vpow2.f32 %v1039_v56 }
 0x336   :  { %v1301_v57 = vpop.eup %1300 }
 0x337   :  { %v1303_v58 = vpop.eup %1302  ;;  %v1025_v1 = vmul.f32 %v1301_v57, %v1487_v23 }
 0x338   :  { %v1029_v59 = vadd.f32 %v1303_v58, %v1301_v57  ;;  %v1305_v60 = vpop.eup %1304  ;;  %v1030_v2 = vmul.f32 %v1303_v58, %v1485_v16 }
 0x339   :  { %v1307_v62 = vpop.eup %1306  ;;  %v1036_v4 = vmul.f32 %v1305_v60, %v1476_v11 }
 0x33a   :  { %v1035_v61 = vadd.f32 %v1305_v60, %v1029_v59  ;;  %v1031_v3 = vadd.f32 %v1030_v2, %v1025_v1  ;;  %v1042_v9 = vmul.f32 0.0, %v1307_v62 }
 0x33c   :  { %v1041_v63 = vadd.f32 %v1307_v62, %v1035_v61  ;;  %v1037_v8 = vadd.f32 %v1036_v4, %v1031_v3 }
 0x33e   :  { %1308 = vrcp.f32 %v1041_v63  ;;  %v1043_v10 = vadd.f32 %v1042_v9, %v1037_v8 }
 0x34b   :  { %v1309_v12 = vpop.eup %1308 }
 0x34c   :  { %v1045_v13 = vmul.f32 %v1309_v12, %v1043_v10 }
 0x34e   :  { %1046 = vst.msk [vmem:[%s1591_s8] sm:$0xff] %vm40_vm0, %v1045_v13 }

</bundles_post_ra>
